<compile_context>
chip_gen: v7x
topology: tpu7x:2x2x1
jax: 0.10.0
libtpu: 0.0.40
codegen_flags: <defaults>
</compile_context>

<pallas_src>
import functools

import jax
import jax.numpy as jnp
from jax.experimental import pallas as pl
from jax.experimental.pallas import tpu as pltpu

KH = KW = 3  # kernel_size=(3,3), padding=1


# ---------------------------------------------------------------------------
# Fused kernel: conv (im2col + single MXU matmul) + BN-stat accumulation,
# with BN-affine + ReLU applied in place on the final grid step.
# ---------------------------------------------------------------------------
def _conv_block_kernel(x_ref, w_ref, gamma_ref, beta_ref, out_ref,
                       xpad_ref, sum_ref, sq_ref, *, n_batch, eps):
    # x_ref:     (1, Cin, H, W)      one image (channel-major)
    # w_ref:     (Cout, KH*KW*Cin)   flattened taps (tap-major, then cin)
    # gamma_ref: (Cout, 1)           BN weight
    # beta_ref:  (Cout, 1)           BN bias
    # out_ref:   (N, Cout, H*W)      resident across the whole grid (constant index_map)
    # xpad_ref:  (Cin, H+2, W+2)     VMEM scratch: zero-padded image
    # sum_ref:   (Cout, 1)           VMEM scratch: running per-channel sum(y)
    # sq_ref:    (Cout, 1)           VMEM scratch: running per-channel sum(y*y)
    n = pl.program_id(0)
    Cin, H, W = x_ref.shape[1], x_ref.shape[2], x_ref.shape[3]
    HW = H * W

    @pl.when(n == 0)
    def _():
        sum_ref[...] = jnp.zeros_like(sum_ref)
        sq_ref[...] = jnp.zeros_like(sq_ref)

    # In-kernel zero padding (halo) — avoids a wrapper-side jnp.pad HBM pass.
    xpad_ref[...] = jnp.zeros_like(xpad_ref)
    xpad_ref[:, 1:H + 1, 1:W + 1] = x_ref[0]
    xpad = xpad_ref[...]

    # im2col patch matrix: contraction axis = 9*Cin, lane axis = H*W.
    taps = [xpad[:, kh:kh + H, kw:kw + W]
            for kh in range(KH) for kw in range(KW)]
    patch = jnp.concatenate(taps, axis=0).reshape(KH * KW * Cin, HW)

    # Single MXU matmul (K = 9*Cin), f32 accumulation, lane-dense result (Cout, HW).
    y = jnp.dot(w_ref[...], patch, preferred_element_type=jnp.float32)
    out_ref[n] = y  # stays in VMEM until the final writeback

    # BatchNorm partial statistics (lane reduce on the XLU — cheap).
    sum_ref[...] += jnp.sum(y, axis=1, keepdims=True)
    sq_ref[...] += jnp.sum(y * y, axis=1, keepdims=True)

    # Finalize on the last image: batch stats -> scale/bias, then affine+ReLU in place.
    @pl.when(n == n_batch - 1)
    def _():
        count = float(n_batch * HW)
        mean = sum_ref[...] / count                                   # (Cout, 1)
        var = jnp.maximum(sq_ref[...] / count - mean * mean, 0.0)     # biased variance
        scale = gamma_ref[...] * jax.lax.rsqrt(var + eps)             # (Cout, 1)
        bias = beta_ref[...] - mean * scale
        y_all = out_ref[...]                                          # (N, Cout, HW)
        out_ref[...] = jnp.maximum(y_all * scale[None] + bias[None], 0.0)


# ---------------------------------------------------------------------------
# ConvBlock forward (NCHW in / NCHW out, matching the PyTorch module)
# ---------------------------------------------------------------------------
def conv_block_forward(x_nchw, w_oihw, gamma, beta, eps=1e-5):
    N, Cin, H, W = x_nchw.shape
    Cout = w_oihw.shape[0]
    HW = H * W

    # OIHW -> (Cout, KH*KW*Cin), tap-major then cin (matches in-kernel patch order).
    w_mat = jnp.transpose(w_oihw, (0, 2, 3, 1)).reshape(Cout, KH * KW * Cin)
    w_mat = w_mat.astype(jnp.float32)
    gamma2 = gamma.reshape(Cout, 1).astype(jnp.float32)
    beta2 = beta.reshape(Cout, 1).astype(jnp.float32)

    kernel = functools.partial(_conv_block_kernel, n_batch=N, eps=float(eps))

    out = pl.pallas_call(
        kernel,
        out_shape=jax.ShapeDtypeStruct((N, Cout, HW), jnp.float32),
        grid=(N,),
        in_specs=[
            pl.BlockSpec((1, Cin, H, W), lambda n: (n, 0, 0, 0)),
            pl.BlockSpec((Cout, KH * KW * Cin), lambda n: (0, 0)),
            pl.BlockSpec((Cout, 1), lambda n: (0, 0)),
            pl.BlockSpec((Cout, 1), lambda n: (0, 0)),
        ],
        # Constant index_map => output block resident in VMEM across the grid
        # (written back to HBM once, after the final step).
        out_specs=pl.BlockSpec((N, Cout, HW), lambda n: (0, 0, 0)),
        scratch_shapes=[
            pltpu.VMEM((Cin, H + 2, W + 2), jnp.float32),   # padded image
            pltpu.VMEM((Cout, 1), jnp.float32),             # running sum(y)
            pltpu.VMEM((Cout, 1), jnp.float32),             # running sum(y*y)
        ],
        compiler_params=pltpu.CompilerParams(dimension_semantics=("arbitrary",)),
    )(x_nchw.astype(jnp.float32), w_mat, gamma2, beta2)

    return out.reshape(N, Cout, H, W)  # free metadata reshape


# ---------------------------------------------------------------------------
# Pure-JAX reference for verification
# ---------------------------------------------------------------------------
def reference_forward(x, w, gamma, beta, eps=1e-5):
    y = jax.lax.conv_general_dilated(
        x, w, window_strides=(1, 1), padding=[(1, 1), (1, 1)],
        dimension_numbers=("NCHW", "OIHW", "NCHW"))
    mean = jnp.mean(y, axis=(0, 2, 3), keepdims=True)
    var = jnp.mean((y - mean) ** 2, axis=(0, 2, 3), keepdims=True)
    yn = (y - mean) / jnp.sqrt(var + eps)
    yn = yn * gamma.reshape(1, -1, 1, 1) + beta.reshape(1, -1, 1, 1)
    return jnp.maximum(yn, 0.0)


if __name__ == "__main__":
    # Small shapes consistent with the module: batch=2, in_channels=4, spatial=16,
    # out_channels=8.
    N, Cin, H, W = 2, 4, 16, 16
    Cout = 8

    key = jax.random.PRNGKey(0)
    k_x, k_w, k_g, k_b = jax.random.split(key, 4)

    x = jax.random.normal(k_x, (N, Cin, H, W), dtype=jnp.float32)
    # Conv2d weight (out_channels, in_channels, 3, 3), bias=False.
    w = jax.random.normal(k_w, (Cout, Cin, KH, KW), dtype=jnp.float32) * (
        1.0 / jnp.sqrt(Cin * KH * KW))
    # BatchNorm2d affine params (non-trivial values to exercise the affine path).
    gamma = 1.0 + 0.1 * jax.random.normal(k_g, (Cout,), dtype=jnp.float32)
    beta = 0.1 * jax.random.normal(k_b, (Cout,), dtype=jnp.float32)

    out = conv_block_forward(x, w, gamma, beta)
    out = jax.block_until_ready(out)

    ref = reference_forward(x, w, gamma, beta)
    assert out.shape == (N, Cout, H, W)
    err = float(jnp.max(jnp.abs(out - ref)))
    assert jnp.allclose(out, ref, atol=2e-4, rtol=2e-4), (
        f"mismatch vs reference: max abs err = {err}")

    print("KERNEL_OK")
</pallas_src>

<mosaic_0001>
module attributes {stable_mosaic.version = 11 : i64} {
  func.func @_conv_block_kernel(%arg0: i32, %arg1: memref<1x4x16x16xf32, #tpu.memory_space<vmem>>, %arg2: memref<8x36xf32, #tpu.memory_space<vmem>>, %arg3: memref<8x1xf32, #tpu.memory_space<vmem>>, %arg4: memref<8x1xf32, #tpu.memory_space<vmem>>, %arg5: memref<2x8x256xf32, #tpu.memory_space<vmem>>, %arg6: memref<4x18x18xf32, #tpu.memory_space<vmem>>, %arg7: memref<8x1xf32, #tpu.memory_space<vmem>>, %arg8: memref<8x1xf32, #tpu.memory_space<vmem>>) attributes {dimension_semantics = [#tpu.dimension_semantics<arbitrary>], iteration_bounds = array<i64: 2>, scalar_prefetch = 0 : i64, scratch_operands = 3 : i64, tpu.core_type = #tpu.core_type<tc>, window_params = [{transform_indices = @transform_0, window_bounds = array<i64: 1, 4, 16, 16>}, {pipeline_mode = #tpu.pipeline_mode<synchronous>, transform_indices = @transform_1, window_bounds = array<i64: 8, 36>}, {pipeline_mode = #tpu.pipeline_mode<synchronous>, transform_indices = @transform_2, window_bounds = array<i64: 8, 1>}, {pipeline_mode = #tpu.pipeline_mode<synchronous>, transform_indices = @transform_3, window_bounds = array<i64: 8, 1>}, {pipeline_mode = #tpu.pipeline_mode<synchronous>, transform_indices = @transform_4, window_bounds = array<i64: 2, 8, 256>}]} {
    %c0_i32 = arith.constant 0 : i32
    %0 = arith.cmpi eq, %arg0, %c0_i32 : i32
    %1 = arith.extui %0 : i1 to i32
    %c0_i32_0 = arith.constant 0 : i32
    %2 = arith.cmpi ne, %1, %c0_i32_0 : i32
    scf.if %2 {
      %cst_28 = arith.constant 0.000000e+00 : f32
      %40 = vector.broadcast %cst_28 : f32 to vector<8x1xf32>
      %c0_29 = arith.constant 0 : index
      %c0_30 = arith.constant 0 : index
      %41 = vector.load %arg7[%c0_29, %c0_30] : memref<8x1xf32, #tpu.memory_space<vmem>>, vector<8x1xf32>
      tpu.vector_store %arg7[%c0_29, %c0_30], %40 {strides = array<i32>} : memref<8x1xf32, #tpu.memory_space<vmem>>, vector<8x1xf32>,
      %cst_31 = arith.constant 0.000000e+00 : f32
      %42 = vector.broadcast %cst_31 : f32 to vector<8x1xf32>
      %c0_32 = arith.constant 0 : index
      %c0_33 = arith.constant 0 : index
      %43 = vector.load %arg8[%c0_32, %c0_33] : memref<8x1xf32, #tpu.memory_space<vmem>>, vector<8x1xf32>
      tpu.vector_store %arg8[%c0_32, %c0_33], %42 {strides = array<i32>} : memref<8x1xf32, #tpu.memory_space<vmem>>, vector<8x1xf32>,
    } else {
    }
    %cst = arith.constant 0.000000e+00 : f32
    %3 = vector.broadcast %cst : f32 to vector<4x18x18xf32>
    %c0 = arith.constant 0 : index
    %c0_1 = arith.constant 0 : index
    %c0_2 = arith.constant 0 : index
    %4 = vector.load %arg6[%c0, %c0_1, %c0_2] : memref<4x18x18xf32, #tpu.memory_space<vmem>>, vector<4x18x18xf32>
    tpu.vector_store %arg6[%c0, %c0_1, %c0_2], %3 {strides = array<i32>} : memref<4x18x18xf32, #tpu.memory_space<vmem>>, vector<4x18x18xf32>,
    %c0_3 = arith.constant 0 : index
    %c0_4 = arith.constant 0 : index
    %c0_5 = arith.constant 0 : index
    %c0_6 = arith.constant 0 : index
    %5 = vector.load %arg1[%c0_3, %c0_4, %c0_5, %c0_6] : memref<1x4x16x16xf32, #tpu.memory_space<vmem>>, vector<1x4x16x16xf32>
    %6 = vector.shape_cast %5 : vector<1x4x16x16xf32> to vector<4x16x16xf32>
    %c0_7 = arith.constant 0 : index
    %c1 = arith.constant 1 : index
    %c1_8 = arith.constant 1 : index
    %7 = vector.load %arg6[%c0_7, %c1, %c1_8] : memref<4x18x18xf32, #tpu.memory_space<vmem>>, vector<4x16x16xf32>
    tpu.vector_store %arg6[%c0_7, %c1, %c1_8], %6 {strides = array<i32>} : memref<4x18x18xf32, #tpu.memory_space<vmem>>, vector<4x16x16xf32>,
    %c0_9 = arith.constant 0 : index
    %c0_10 = arith.constant 0 : index
    %c0_11 = arith.constant 0 : index
    %8 = vector.load %arg6[%c0_9, %c0_10, %c0_11] : memref<4x18x18xf32, #tpu.memory_space<vmem>>, vector<4x18x18xf32>
    %9 = vector.extract_strided_slice %8 {offsets = [0, 0, 0], sizes = [4, 16, 16], strides = [1, 1, 1]} : vector<4x18x18xf32> to vector<4x16x16xf32>
    %10 = vector.extract_strided_slice %8 {offsets = [0, 0, 1], sizes = [4, 16, 16], strides = [1, 1, 1]} : vector<4x18x18xf32> to vector<4x16x16xf32>
    %11 = vector.extract_strided_slice %8 {offsets = [0, 0, 2], sizes = [4, 16, 16], strides = [1, 1, 1]} : vector<4x18x18xf32> to vector<4x16x16xf32>
    %12 = vector.extract_strided_slice %8 {offsets = [0, 1, 0], sizes = [4, 16, 16], strides = [1, 1, 1]} : vector<4x18x18xf32> to vector<4x16x16xf32>
    %13 = vector.extract_strided_slice %8 {offsets = [0, 1, 1], sizes = [4, 16, 16], strides = [1, 1, 1]} : vector<4x18x18xf32> to vector<4x16x16xf32>
    %14 = vector.extract_strided_slice %8 {offsets = [0, 1, 2], sizes = [4, 16, 16], strides = [1, 1, 1]} : vector<4x18x18xf32> to vector<4x16x16xf32>
    %15 = vector.extract_strided_slice %8 {offsets = [0, 2, 0], sizes = [4, 16, 16], strides = [1, 1, 1]} : vector<4x18x18xf32> to vector<4x16x16xf32>
    %16 = vector.extract_strided_slice %8 {offsets = [0, 2, 1], sizes = [4, 16, 16], strides = [1, 1, 1]} : vector<4x18x18xf32> to vector<4x16x16xf32>
    %17 = vector.extract_strided_slice %8 {offsets = [0, 2, 2], sizes = [4, 16, 16], strides = [1, 1, 1]} : vector<4x18x18xf32> to vector<4x16x16xf32>
    %18 = tpu.concatenate %9, %10, %11, %12, %13, %14, %15, %16, %17 in 0 : vector<4x16x16xf32>, vector<4x16x16xf32>, vector<4x16x16xf32>, vector<4x16x16xf32>, vector<4x16x16xf32>, vector<4x16x16xf32>, vector<4x16x16xf32>, vector<4x16x16xf32>, vector<4x16x16xf32> -> vector<36x16x16xf32>
    %19 = vector.shape_cast %18 : vector<36x16x16xf32> to vector<36x256xf32>
    %c0_12 = arith.constant 0 : index
    %c0_13 = arith.constant 0 : index
    %20 = vector.load %arg2[%c0_12, %c0_13] : memref<8x36xf32, #tpu.memory_space<vmem>>, vector<8x36xf32>
    %cst_14 = arith.constant dense<0.000000e+00> : vector<8x256xf32>
    %21 = tpu.matmul %20, %19, %cst_14 {dimension_numbers = #tpu.dot_dimension_numbers<[1], [0], [0], [1], [0, 0, 1, 1], [], []>} : vector<8x36xf32>, vector<36x256xf32>, vector<8x256xf32> -> vector<8x256xf32>
    %22 = arith.index_cast %arg0 : i32 to index
    %c0_15 = arith.constant 0 : index
    %c0_16 = arith.constant 0 : index
    %23 = vector.load %arg5[%22, %c0_15, %c0_16] : memref<2x8x256xf32, #tpu.memory_space<vmem>>, vector<1x8x256xf32>
    %24 = vector.shape_cast %23 : vector<1x8x256xf32> to vector<8x256xf32>
    %25 = vector.shape_cast %21 : vector<8x256xf32> to vector<1x8x256xf32>
    tpu.vector_store %arg5[%22, %c0_15, %c0_16], %25 {strides = array<i32>} : memref<2x8x256xf32, #tpu.memory_space<vmem>>, vector<1x8x256xf32>,
    %c0_17 = arith.constant 0 : index
    %c0_18 = arith.constant 0 : index
    %26 = vector.load %arg7[%c0_17, %c0_18] : memref<8x1xf32, #tpu.memory_space<vmem>>, vector<8x1xf32>
    %cst_19 = arith.constant dense<0.000000e+00> : vector<8xf32>
    %27 = vector.multi_reduction <add>, %21, %cst_19 [1] : vector<8x256xf32> to vector<8xf32>
    %28 = vector.shape_cast %27 : vector<8xf32> to vector<8x1xf32>
    %29 = arith.addf %26, %28 : vector<8x1xf32>
    %c0_20 = arith.constant 0 : index
    %c0_21 = arith.constant 0 : index
    %30 = vector.load %arg7[%c0_20, %c0_21] : memref<8x1xf32, #tpu.memory_space<vmem>>, vector<8x1xf32>
    tpu.vector_store %arg7[%c0_20, %c0_21], %29 {strides = array<i32>} : memref<8x1xf32, #tpu.memory_space<vmem>>, vector<8x1xf32>,
    %c0_22 = arith.constant 0 : index
    %c0_23 = arith.constant 0 : index
    %31 = vector.load %arg8[%c0_22, %c0_23] : memref<8x1xf32, #tpu.memory_space<vmem>>, vector<8x1xf32>
    %32 = arith.mulf %21, %21 : vector<8x256xf32>
    %cst_24 = arith.constant dense<0.000000e+00> : vector<8xf32>
    %33 = vector.multi_reduction <add>, %32, %cst_24 [1] : vector<8x256xf32> to vector<8xf32>
    %34 = vector.shape_cast %33 : vector<8xf32> to vector<8x1xf32>
    %35 = arith.addf %31, %34 : vector<8x1xf32>
    %c0_25 = arith.constant 0 : index
    %c0_26 = arith.constant 0 : index
    %36 = vector.load %arg8[%c0_25, %c0_26] : memref<8x1xf32, #tpu.memory_space<vmem>>, vector<8x1xf32>
    tpu.vector_store %arg8[%c0_25, %c0_26], %35 {strides = array<i32>} : memref<8x1xf32, #tpu.memory_space<vmem>>, vector<8x1xf32>,
    %c1_i32 = arith.constant 1 : i32
    %37 = arith.cmpi eq, %arg0, %c1_i32 : i32
    %38 = arith.extui %37 : i1 to i32
    %c0_i32_27 = arith.constant 0 : i32
    %39 = arith.cmpi ne, %38, %c0_i32_27 : i32
    scf.if %39 {
      %c0_28 = arith.constant 0 : index
      %c0_29 = arith.constant 0 : index
      %40 = vector.load %arg7[%c0_28, %c0_29] : memref<8x1xf32, #tpu.memory_space<vmem>>, vector<8x1xf32>
      %cst_30 = arith.constant 5.120000e+02 : f32
      %41 = vector.broadcast %cst_30 : f32 to vector<8x1xf32>
      %42 = arith.divf %40, %41 : vector<8x1xf32>
      %c0_31 = arith.constant 0 : index
      %c0_32 = arith.constant 0 : index
      %43 = vector.load %arg8[%c0_31, %c0_32] : memref<8x1xf32, #tpu.memory_space<vmem>>, vector<8x1xf32>
      %cst_33 = arith.constant 5.120000e+02 : f32
      %44 = vector.broadcast %cst_33 : f32 to vector<8x1xf32>
      %45 = arith.divf %43, %44 : vector<8x1xf32>
      %46 = arith.mulf %42, %42 : vector<8x1xf32>
      %47 = arith.subf %45, %46 : vector<8x1xf32>
      %cst_34 = arith.constant 0.000000e+00 : f32
      %48 = vector.broadcast %cst_34 : f32 to vector<8x1xf32>
      %49 = arith.maximumf %47, %48 : vector<8x1xf32>
      %c0_35 = arith.constant 0 : index
      %c0_36 = arith.constant 0 : index
      %50 = vector.load %arg3[%c0_35, %c0_36] : memref<8x1xf32, #tpu.memory_space<vmem>>, vector<8x1xf32>
      %cst_37 = arith.constant 9.99999974E-6 : f32
      %51 = vector.broadcast %cst_37 : f32 to vector<8x1xf32>
      %52 = arith.addf %49, %51 : vector<8x1xf32>
      %53 = math.rsqrt %52 : vector<8x1xf32>
      %54 = arith.mulf %50, %53 : vector<8x1xf32>
      %c0_38 = arith.constant 0 : index
      %c0_39 = arith.constant 0 : index
      %55 = vector.load %arg4[%c0_38, %c0_39] : memref<8x1xf32, #tpu.memory_space<vmem>>, vector<8x1xf32>
      %56 = arith.mulf %42, %54 : vector<8x1xf32>
      %57 = arith.subf %55, %56 : vector<8x1xf32>
      %c0_40 = arith.constant 0 : index
      %c0_41 = arith.constant 0 : index
      %c0_42 = arith.constant 0 : index
      %58 = vector.load %arg5[%c0_40, %c0_41, %c0_42] : memref<2x8x256xf32, #tpu.memory_space<vmem>>, vector<2x8x256xf32>
      %59 = vector.shape_cast %54 : vector<8x1xf32> to vector<1x8x1xf32>
      %60 = vector.broadcast %59 : vector<1x8x1xf32> to vector<2x8x256xf32>
      %61 = arith.mulf %58, %60 : vector<2x8x256xf32>
      %62 = vector.shape_cast %57 : vector<8x1xf32> to vector<1x8x1xf32>
      %63 = vector.broadcast %62 : vector<1x8x1xf32> to vector<2x8x256xf32>
      %64 = arith.addf %61, %63 : vector<2x8x256xf32>
      %cst_43 = arith.constant 0.000000e+00 : f32
      %65 = vector.broadcast %cst_43 : f32 to vector<2x8x256xf32>
      %66 = arith.maximumf %64, %65 : vector<2x8x256xf32>
      %c0_44 = arith.constant 0 : index
      %c0_45 = arith.constant 0 : index
      %c0_46 = arith.constant 0 : index
      %67 = vector.load %arg5[%c0_44, %c0_45, %c0_46] : memref<2x8x256xf32, #tpu.memory_space<vmem>>, vector<2x8x256xf32>
      tpu.vector_store %arg5[%c0_44, %c0_45, %c0_46], %66 {strides = array<i32>} : memref<2x8x256xf32, #tpu.memory_space<vmem>>, vector<2x8x256xf32>,
    } else {
    }
    return
  }
  func.func @transform_0(%arg0: i32) -> (i32, i32, i32, i32) {
    %c0_i32 = arith.constant 0 : i32
    %c0_i32_0 = arith.constant 0 : i32
    %c0_i32_1 = arith.constant 0 : i32
    %c0_i32_2 = arith.constant 0 : i32
    return %arg0, %c0_i32, %c0_i32_0, %c0_i32_1 : i32, i32, i32, i32
  }
  func.func @transform_1(%arg0: i32) -> (i32, i32) {
    %c0_i32 = arith.constant 0 : i32
    %c0_i32_0 = arith.constant 0 : i32
    %c0_i32_1 = arith.constant 0 : i32
    return %c0_i32, %c0_i32_0 : i32, i32
  }
  func.func @transform_2(%arg0: i32) -> (i32, i32) {
    %c0_i32 = arith.constant 0 : i32
    %c0_i32_0 = arith.constant 0 : i32
    %c0_i32_1 = arith.constant 0 : i32
    return %c0_i32, %c0_i32_0 : i32, i32
  }
  func.func @transform_3(%arg0: i32) -> (i32, i32) {
    %c0_i32 = arith.constant 0 : i32
    %c0_i32_0 = arith.constant 0 : i32
    %c0_i32_1 = arith.constant 0 : i32
    return %c0_i32, %c0_i32_0 : i32, i32
  }
  func.func @transform_4(%arg0: i32) -> (i32, i32, i32) {
    %c0_i32 = arith.constant 0 : i32
    %c0_i32_0 = arith.constant 0 : i32
    %c0_i32_1 = arith.constant 0 : i32
    %c0_i32_2 = arith.constant 0 : i32
    return %c0_i32, %c0_i32_0, %c0_i32_1 : i32, i32, i32
  }
}

</mosaic_0001>

<bundles_post_ra>
// kernel: tpu_custom_call.1
= control target key start
LH: loop header
LB: loop body
LE: loop exit
PB: predicated region body
PF: predicated region fallthrough
CT: control target
= control target key end

     0   :  { %9 = vsyncpa [#allocation6], 0  ;;  %s3789_s0 = inlined_call_operand.hbm [shape: f32[2,4,16,16], index: 0, kind: input, shape index: {}]   ;;  %s3790_s1 = inlined_call_operand.vmem [shape: f32[8,36], index: 1, kind: input, shape index: {}]   ;;  %s3791_s2 = inlined_call_operand.vmem [shape: f32[8,1], index: 2, kind: input, shape index: {}]   ;;  %s3792_s3 = inlined_call_operand.vmem [shape: f32[8,1], index: 3, kind: input, shape index: {}]   ;;  %s3793_s4 = inlined_call_operand.hbm [shape: f32[2,8,256], index: 4, kind: output, shape index: {}]  }
   0x1   :  { %11 = vsyncpa [#allocation6 + $0x1], 0 }
   0x2   :  { %12 = vsyncpa [#allocation7], 0  ;;  %s2679_s15 = smov 0   ;;  %s2681_s16 = smov 0  }
   0x3   :  { %s2683_s17 = smov 0   ;;  %s2685_s18 = smov 0  }
   0x4 LB: > { %s2698_s19 = sadd.s32 4294967295, %s2632_s18   ;;  %s2701_s20 = sadd.s32 1, %s2632_s18   ;;  %s2632_s18 = sphi %s2685_s18, %s3831_s18   ;;  %s2628_s17 = sphi %s2683_s17, %s3830_s17   ;;  %s2624_s16 = sphi %s2681_s16, %s3829_s16   ;;  %s2620_s15 = sphi %s2679_s15, %s3828_s15  }
   0x5   : > { %s22_s21 = ssub.s32 %s2632_s18, %s2701_s20  ;;  %s25_s22 = sadd.s32 1, %s2628_s17 }
   0x6   : > { %p23_p0 = scmp.eq.s32.totalorder %s22_s21, 0  ;;  %p32_p1 = scmp.ne.s32.totalorder %s2628_s17, %s2624_s16 }
   0x7   : > { %p33_p2 = scmp.eq.s32.totalorder %s2632_s18, 0  ;;  %p38_p3 = scmp.ne.s32.totalorder %s2624_s16, %s2620_s15 }
   0x8   : > { %s2711_s23 = scalar_select %p23_p0, %s2628_s17, %s25_s22  }
   0x9   : > { %p34_p4 = por %p33_p2, %p32_p1  ;;  %p39_p5 = scmp.eq.s32.totalorder %s2698_s19, 0 }
   0xa   : > { %p2333_p6 = scmp.lt.s32.totalorder %s2632_s18, 2  ;;  %s155_s25 = sand.u32 1, %s2628_s17  }
   0xb   : > { %p2715_p7 = por %p39_p5, %p38_p3  ;;  %s2297_s26 = sshll.u32 %s155_s25, 6 }
   0xc   : > { %s2313_s27 = sshll.u32 %s2632_s18, 10  ;;  %s159_s5 = scalar_lea.vmem [#allocation5], %s2297_s26 }
   0xd   : > { %s2724_s30 = scalar_lea.hbm %s3789_s0, %s2313_s27  ;;  %s166_s6 = sshll.u32 %s159_s5, 4  ;;  %s2726_s6 = int_to_ptr.vmem [resolvable:$true] %s166_s6 }
   0xe   : > { %p2728_p8 = pnand %p2333_p6, %p34_p4  ;;  %s2733_s8 = scalar_lea.sflag [#allocation6], %s155_s25 }
   0xf   : > { %s2538_s9 = scalar_lea.hbm %s2724_s30, 1024  ;;  %s2543_s12 = scalar_lea.hbm %s3789_s0, 2048 }
  0x10   : > { %p2539_p10 = scmp.ne.s32.totalorder %s2724_s30, %s2538_s9  ;;  %p2540_p11 = pneg %p2728_p8 }
  0x11   : > { %p2544_p0 = scmp.lt.u32.totalorder %s2724_s30, %s3789_s0  ;;  %p2545_p1 = scmp.lt.u32.totalorder %s2543_s12, %s2538_s9 }
  0x12   : > { %p2541_p12 = pnand %p2540_p11, %p2539_p10  ;;  %p2547_p3 = scmp.lt.u32.totalorder %s2538_s9, %s2724_s30 }
  0x13   : > { %p2546_p2 = por %p2545_p1, %p2544_p0 }
  0x14   : > { %p2542_p13 = pneg %p2541_p12 }
  0x15   : > { %p2548_p4 = por %p2547_p3, %p2546_p2 }
  0x17   : > { %p2549_p5 = pnand %p2548_p4, %p2542_p13 }
  0x19   : > { %2552 = shalt.err (!%p2549_p5)
}
  0x1a   : > { %s2553_s15 = scalar_lea.vmem %s2726_s6, 1024  ;;  %s2634_s21 = smov [#allocation5]  }
  0x1b   : > { %p2554_p6 = scmp.ne.s32.totalorder %s2726_s6, %s2553_s15  ;;  %s2558_s22 = sshll.u32 %s2634_s21, 4  ;;  %s2559_s22 = int_to_ptr.vmem [resolvable:$false] %s2558_s22 }
  0x1c   : > { %s2560_s25 = scalar_lea.vmem %s2559_s22, 2048  ;;  %p2561_p9 = scmp.lt.s32.totalorder %s2726_s6, %s2559_s22 }
  0x1d   : > { %p2556_p10 = pnand %p2554_p6, %p2540_p11  ;;  %p2562_p0 = scmp.lt.s32.totalorder %s2560_s25, %s2553_s15 }
  0x1f   : > { %p2557_p12 = pneg %p2556_p10  ;;  %p2563_p1 = por %p2562_p0, %p2561_p9 }
  0x21   : > { %p2564_p2 = pnand %p2563_p1, %p2557_p12 }
  0x23   : > { %2567 = shalt.err (!%p2564_p2)
}
  0x24   : > { %s2635_s26 = smov 128   ;;  %s2636_s27 = smov 8  }
  0x25   : > { %2332 = dma.hbm_to_vmem [thread:$0]  (!%p2728_p8), %s2724_s30, 1024, %s2726_s6, %s2733_s8, %s2635_s26, %s2635_s26, %s2636_s27  }
  0x26   : > { %p174_p11 = scmp.lt.s32.totalorder %s2632_s18, 3  ;;  %p3804_p13 = scmp.ge.s32.totalorder %s2632_s18, 1 }
  0x28   : > { %p175_p3 = pnand %p3804_p13, %p174_p11 }
  0x2a   : > { %178 = sbr.rel (%p175_p3) target bundleno = 1137 (0x471), region = 36 }
  0x31   : > { %s180_s28 = sand.u32 1, %s2624_s16  }
  0x32   : > { %s2301_s29 = sshll.u32 %s180_s28, 6  ;;  %s181_s5 = scalar_lea.sflag [#allocation6], %s180_s28 }
  0x33   : > { %s2765_s9 = scalar_lea.vmem [#allocation5], %s2301_s29 }
  0x34   : > { %2611 = dma.done.wait (%p2715_p7), %s181_s5, 1024  }
  0x35   : > { %2613 = vsyncadd (%p2715_p7), %s181_s5, 4294966272  ;;  %p2302_p9 = scmp.ne.s32.totalorder %s2698_s19, 0 }
  0x36   : > { %vm208_vm0 = vcmask (!%p2302_p9), 7168   ;;  %v2637_v0 = vmov (!%p2302_p9), 0.0  }
  0x37   : > { %207 = sbr.rel (%p2302_p9) target bundleno = 62 (0x3e), region = 44  ;;  %209 = vst.msk [vmem:[#allocation3] sm:$0xff] (!%p2302_p9), %vm208_vm0, %v2637_v0  ;;  %210 = vst.msk [vmem:[#allocation4] sm:$0xff] (!%p2302_p9), %vm208_vm0, %v2637_v0 }
  0x3e PF: > { %v227_v1 = vld [vmem:[%s2765_s9 + $0x10] sm:$0xff]  ;;  %v225_v2 = vld [vmem:[%s2765_s9] sm:$0xff]  ;;  %vm211_vm1 = vcmask 146432   ;;  %s2638_s18 = smov 1   ;;  %vm214_vm2 = vcmask 140288   ;;  %v228_v3 = vld [vmem:[%s2765_s9 + $0x18] sm:$0xff]  ;;  %v505_v21 = vlaneseq }
  0x3f   : > { %245 = vrot.lane.b32.xlu1 %v227_v1, %s2638_s18  ;;  %241 = vrot.lane.b32.xlu0 %v225_v2, %s2638_s18  ;;  %v226_v4 = vld [vmem:[%s2765_s9 + $0x8] sm:$0xff]  ;;  %v3794_v5 = vmov 0.0   ;;  %v229_v7 = vld [vmem:[%s2765_s9 + $0x20] sm:$0xff]  ;;  %vm265_vm3 = vcmask 138248   ;;  %s2640_s24 = smov 127   ;;  %vm346_vm4 = vcmask 1046528  }
  0x40   : > { %216 = vst.msk [vmem:[#allocation2 + $0x18] sm:$0xff] %vm211_vm1, %v3794_v5  ;;  %217 = vst.msk [vmem:[#allocation2 + $0x20] sm:$0xff] %vm211_vm1, %v3794_v5  ;;  %2157 = vmatprep.mubr.f32.mxu0 %v3794_v5  ;;  %v230_v6 = vld [vmem:[%s2765_s9 + $0x28] sm:$0xff]  ;;  %v232_v8 = vld [vmem:[%s2765_s9 + $0x38] sm:$0xff]  ;;  %v2641_v22 = vmov 1983009808  }
  0x41   : > { %212 = vst.msk [vmem:[#allocation2] sm:$0xff] %vm211_vm1, %v3794_v5  ;;  %213 = vst.msk [vmem:[#allocation2 + $0x8] sm:$0xff] %vm211_vm1, %v3794_v5  ;;  %v231_v9 = vld [vmem:[%s2765_s9 + $0x30] sm:$0xff]  ;;  %v503_v23 = vunpack.c.l.s4 %v2641_v22  ;;  %v2821_v30 = vshrl.u32 %v505_v21, 7  ;;  %s2642_s30 = smov 126   ;;  %vm423_vm5 = vcmask 1045504  }
  0x42   : > { %219 = vst.msk [vmem:[#allocation2 + $0x30] sm:$0xff] %vm211_vm1, %v3794_v5  ;;  %220 = vst.msk [vmem:[#allocation2 + $0x38] sm:$0xff] %vm211_vm1, %v3794_v5  ;;  %s2644_s6 = smov 16   ;;  %s2645_s7 = smov 32   ;;  %vm2004_vm6 = vcmask 130048   ;;  %vm2010_vm7 = vcmask 261120  }
  0x43   : > { %222 = vst.msk [vmem:[#allocation2 + $0x48] sm:$0xff] %vm211_vm1, %v3794_v5  ;;  %223 = vst.msk [vmem:[#allocation2 + $0x50] sm:$0xff] %vm211_vm1, %v3794_v5  ;;  %247 = vrot.lane.b32.xlu1 %v228_v3, %s2638_s18  ;;  %243 = vrot.lane.b32.xlu0 %v226_v4, %s2638_s18  ;;  %v504_v34 = vunpack.c.0.s8 %v503_v23  ;;  %s2646_s8 = smov 48   ;;  %s2647_s10 = smov 64   ;;  %vm2016_vm8 = vcmask 392192   ;;  %vm2022_vm9 = vcmask 523264  }
  0x44   : > { %218 = vst.msk [vmem:[#allocation2 + $0x28] sm:$0x3] %vm214_vm2, %v3794_v5  ;;  %215 = vst.msk [vmem:[#allocation2 + $0x10] sm:$0x3] %vm214_vm2, %v3794_v5  ;;  %s2648_s11 = smov 80   ;;  %s2649_s12 = smov 96  }
  0x45   : > { %221 = vst.msk [vmem:[#allocation2 + $0x40] sm:$0x3] %vm214_vm2, %v3794_v5  ;;  %224 = vst.msk [vmem:[#allocation2 + $0x58] sm:$0x3] %vm214_vm2, %v3794_v5  ;;  %v2865_v52 = vsub.s32 %v504_v34, %v2821_v30  ;;  %s2650_s13 = smov 112   ;;  %vm2028_vm10 = vcmask 654336  }
  0x46   : > { %vm2034_vm11 = vcmask 785408   ;;  %vm2040_vm12 = vcmask 916480   ;;  %vm2086_vm13 = vcmask 1043456   ;;  %vm2082_vm14 = vcmask 293888   ;;  %s2314_s21 = sshll.u32 %s2698_s19, 4  ;;  %p2308_p7 = scmp.ne.s32.totalorder %s2698_s19, 1 }
  0x47   : > { %251 = vrot.lane.b32.xlu1 %v230_v6, %s2638_s18  ;;  %249 = vrot.lane.b32.xlu0 %v229_v7, %s2638_s18  ;;  %s2166_s22 = scalar_lea.vmem [#allocation8], %s2314_s21  ;;  %vm2174_vm15 = vcmask 7168  }
  0x4b   : > { %255 = vrot.lane.b32.xlu1 %v232_v8, %s2638_s18  ;;  %253 = vrot.lane.b32.xlu0 %v231_v9, %s2638_s18 }
  0xb1   : > { %v246_v10 = vpop.permute.xlu1 %245  ;;  %v242_v11 = vpop.permute.xlu0 %241 }
  0xb2   : > { %268 = vst.msk [vmem:[#allocation2 + $0x19] sm:$0xff] %vm265_vm3, %v246_v10  ;;  %266 = vst.msk [vmem:[#allocation2 + $0x1] sm:$0xff] %vm265_vm3, %v242_v11 }
  0xb5   : > { %v248_v12 = vpop.permute.xlu1 %247  ;;  %v244_v13 = vpop.permute.xlu0 %243 }
  0xb6   : > { %269 = vst.msk [vmem:[#allocation2 + $0x21] sm:$0xff] %vm265_vm3, %v248_v12  ;;  %267 = vst.msk [vmem:[#allocation2 + $0x9] sm:$0xff] %vm265_vm3, %v244_v13 }
  0xb9   : > { %v252_v14 = vpop.permute.xlu1 %251  ;;  %v250_v15 = vpop.permute.xlu0 %249  ;;  %v2828_v35 = vld [vmem:[#allocation2] sm:$0xff]  ;;  %v2860_v49 = vld [vmem:[#allocation2 + $0x18] sm:$0xff] }
  0xba   : > { %271 = vst.msk [vmem:[#allocation2 + $0x39] sm:$0xff] %vm265_vm3, %v252_v14  ;;  %270 = vst.msk [vmem:[#allocation2 + $0x31] sm:$0xff] %vm265_vm3, %v250_v15  ;;  %v347_v53 = vrot.slane %v2828_v35, 1  ;;  %v352_v61 = vrot.slane %v2860_v49, 1 }
  0xbd   : > { %v256_v16 = vpop.permute.xlu1 %255  ;;  %v254_v17 = vpop.permute.xlu0 %253  ;;  %v2799_v18 = vld [vmem:[#allocation2 + $0x20] sm:$0xff]  ;;  %v2801_v19 = vld [vmem:[#allocation2 + $0x8] sm:$0xff]  ;;  %v2803_v20 = vld [vmem:[#allocation2 + $0x10] sm:$0x3] }
  0xbe   : > { %273 = vst.msk [vmem:[#allocation2 + $0x51] sm:$0xff] %vm265_vm3, %v256_v16  ;;  %272 = vst.msk [vmem:[#allocation2 + $0x49] sm:$0xff] %vm265_vm3, %v254_v17  ;;  %300 = vrot.lane.b32.xlu1 %v2799_v18, %s2640_s24  ;;  %296 = vrot.lane.b32.xlu0 %v2801_v19, %s2640_s24  ;;  %v348_v24 = vrot.slane %v2801_v19, 1  ;;  %v350_v25 = vrot.slane %v2803_v20, 1  ;;  %v2813_v26 = vld [vmem:[#allocation2 + $0x28] sm:$0x3] }
  0xbf   : > { %v353_v31 = vrot.slane %v2799_v18, 1  ;;  %v355_v37 = vrot.slane %v2813_v26, 1 }
  0xc0   : > { %v2831_v36 = vsel %vm346_vm4, %v348_v24, %v350_v25  ;;  %v2883_v60 = vsel %vm346_vm4, %v347_v53, %v348_v24 }
  0xc1   : > { %v2815_v27 = vld [vmem:[#allocation2 + $0x38] sm:$0xff]  ;;  %v2817_v28 = vld [vmem:[#allocation2 + $0x30] sm:$0xff]  ;;  %v2819_v29 = vld [vmem:[#allocation2 + $0x40] sm:$0x3]  ;;  %v2869_v54 = vsel %vm346_vm4, %v353_v31, %v355_v37  ;;  %v2898_v1 = vsel %vm346_vm4, %v352_v61, %v353_v31  ;;  %v425_v61 = vrot.slane %v2801_v19, 2 }
  0xc2   : > { %304 = vrot.lane.b32.xlu0 %v2815_v27, %s2640_s24  ;;  %v358_v32 = vrot.slane %v2815_v27, 1  ;;  %v360_v33 = vrot.slane %v2819_v29, 1  ;;  %v1112_v38 = vcombine.low %v2801_v19, %v2815_v27  ;;  %v1113_v39 = vcombine.high %v2801_v19, %v2815_v27 }
  0xc3   : > { %v357_v41 = vrot.slane %v2817_v28, 1  ;;  %v500_v42 = vcombine.low %v2828_v35, %v2817_v28  ;;  %v501_v43 = vcombine.high %v2828_v35, %v2817_v28 }
  0xc4   : > { %v2839_v40 = vsel %vm346_vm4, %v358_v32, %v360_v33  ;;  %v2920_v9 = vrot.slane %v1112_v38, %v2865_v52  ;;  %v2963_v33 = vrot.slane %v1113_v39, %v2865_v52 }
  0xc5   : > { %v2846_v44 = vld [vmem:[#allocation2 + $0x50] sm:$0xff]  ;;  %v2848_v45 = vld [vmem:[#allocation2 + $0x48] sm:$0xff]  ;;  %v1280_v46 = vcombine.low %v2831_v36, %v2839_v40  ;;  %v1281_v47 = vcombine.high %v2831_v36, %v2839_v40  ;;  %v2854_v48 = vld [vmem:[#allocation2 + $0x58] sm:$0x3]  ;;  %v2875_v56 = vsel %vm346_vm4, %v357_v41, %v358_v32  ;;  %v2975_v38 = vrot.slane %v500_v42, %v2865_v52 }
  0xc6   : > { %308 = vrot.lane.b32.xlu1 %v2846_v44, %s2640_s24  ;;  %320 = vrot.lane.b32.xlu0 %v2801_v19, %s2642_s30  ;;  %v363_v50 = vrot.slane %v2846_v44, 1  ;;  %v365_v51 = vrot.slane %v2854_v48, 1  ;;  %v362_v57 = vrot.slane %v2848_v45, 1  ;;  %v668_v62 = vcombine.low %v2883_v60, %v2875_v56 }
  0xc7   : > { %v669_v63 = vcombine.high %v2883_v60, %v2875_v56  ;;  %v1128_v6 = vcombine.low %v2799_v18, %v2846_v44  ;;  %v2914_v7 = vrot.slane %v1280_v46, %v2865_v52  ;;  %v2933_v14 = vrot.slane %v1281_v47, %v2865_v52 }
  0xc8   : > { %v2872_v55 = vsel %vm346_vm4, %v363_v50, %v365_v51  ;;  %v2895_v0 = vsel %vm346_vm4, %v362_v57, %v363_v50  ;;  %v2942_v16 = vrot.slane %v668_v62, %v2865_v52  ;;  %v1129_v22 = vcombine.high %v2799_v18, %v2846_v44 }
  0xc9   : > { %v1296_v58 = vcombine.low %v2869_v54, %v2872_v55  ;;  %v1297_v59 = vcombine.high %v2869_v54, %v2872_v55  ;;  %v684_v3 = vcombine.low %v2898_v1, %v2895_v0  ;;  %v685_v4 = vcombine.high %v2898_v1, %v2895_v0 }
  0xca   : > { %324 = vrot.lane.b32.xlu1 %v2799_v18, %s2642_s30  ;;  %328 = vrot.lane.b32.xlu0 %v2815_v27, %s2642_s30  ;;  %v2923_v10 = vrot.slane %v1128_v6, %v2865_v52  ;;  %v516_v24 = vcombine.low %v2860_v49, %v2848_v45  ;;  %v2960_v32 = vrot.slane %v669_v63, %v2865_v52  ;;  %v427_v62 = vrot.slane %v2803_v20, 2 }
  0xcb   : > { %v2901_v2 = vrot.slane %v1296_v58, %v2865_v52  ;;  %v2917_v8 = vrot.slane %v1297_v59, %v2865_v52  ;;  %v2926_v11 = vrot.slane %v684_v3, %v2865_v52  ;;  %v2947_v21 = vrot.slane %v685_v4, %v2865_v52 }
  0xcc   : > { %v1176_v15 = vcombine.low %v2920_v9, %v2923_v10  ;;  %v1177_v17 = vcombine.high %v2920_v9, %v2923_v10  ;;  %v2966_v34 = vrot.slane %v1129_v22, %v2865_v52  ;;  %v517_v37 = vcombine.high %v2860_v49, %v2848_v45 }
  0xcd   : > { %v1344_v12 = vcombine.low %v2914_v7, %v2901_v2  ;;  %v1345_v13 = vcombine.high %v2914_v7, %v2901_v2  ;;  %v1360_v23 = vcombine.low %v2933_v14, %v2917_v8  ;;  %v732_v25 = vcombine.low %v2942_v16, %v2926_v11 }
  0xce   : > { %332 = vrot.lane.b32.xlu1 %v2846_v44, %s2642_s30  ;;  %294 = vrot.lane.b32.xlu0 %v2828_v35, %s2640_s24  ;;  %v733_v31 = vcombine.high %v2942_v16, %v2926_v11  ;;  %v2978_v41 = vrot.slane %v516_v24, %v2865_v52  ;;  %v2981_v39 = vrot.slane %v501_v43, %v2865_v52  ;;  %v430_v63 = vrot.slane %v2799_v18, 2 }
  0xcf   : > { %v1192_v46 = vcombine.low %v2963_v33, %v2966_v34  ;;  %v2986_v47 = vrot.slane %v517_v37, %v2865_v52  ;;  %v748_v50 = vcombine.low %v2960_v32, %v2947_v21  ;;  %v1193_v51 = vcombine.high %v2963_v33, %v2966_v34 }
  0xd0   : > { %v564_v42 = vcombine.low %v2975_v38, %v2978_v41  ;;  %v565_v53 = vcombine.high %v2975_v38, %v2978_v41  ;;  %v1361_v43 = vcombine.high %v2933_v14, %v2917_v8  ;;  %v3028_v3 = vsel %vm423_vm5, %v425_v61, %v427_v62 }
  0xd1   : > { %v580_v58 = vcombine.low %v2981_v39, %v2986_v47  ;;  %v432_v4 = vrot.slane %v2813_v26, 2  ;;  %v437_v19 = vrot.slane %v2819_v29, 2  ;;  %v442_v26 = vrot.slane %v2854_v48, 2 }
  0xd2   : > { %298 = vrot.lane.b32.xlu1 %v2860_v49, %s2640_s24  ;;  %302 = vrot.lane.b32.xlu0 %v2817_v28, %s2640_s24  ;;  %v424_v29 = vrot.slane %v2828_v35, 2  ;;  %v434_v48 = vrot.slane %v2817_v28, 2 }
  0xd3   : > { %v3038_v20 = vsel %vm423_vm5, %v430_v63, %v432_v4 }
  0xd6   : > { %306 = vrot.lane.b32.xlu1 %v2848_v45, %s2640_s24  ;;  %318 = vrot.lane.b32.xlu0 %v2828_v35, %s2642_s30  ;;  %v439_v35 = vrot.slane %v2848_v45, 2 }
  0xda   : > { %322 = vrot.lane.b32.xlu1 %v2860_v49, %s2642_s30  ;;  %326 = vrot.lane.b32.xlu0 %v2817_v28, %s2642_s30 }
  0xde   : > { %330 = vrot.lane.b32.xlu1 %v2848_v45, %s2642_s30  ;;  %377 = vrot.lane.b32.xlu0 %v2831_v36, %s2640_s24 }
  0xe2   : > { %381 = vrot.lane.b32.xlu1 %v2869_v54, %s2640_s24  ;;  %385 = vrot.lane.b32.xlu0 %v2839_v40, %s2640_s24 }
  0xe6   : > { %389 = vrot.lane.b32.xlu1 %v2872_v55, %s2640_s24  ;;  %401 = vrot.lane.b32.xlu0 %v2831_v36, %s2642_s30  ;;  %v435_v36 = vrot.slane %v2815_v27, 2 }
  0xe8   : > { %v3041_v18 = vsel %vm423_vm5, %v435_v36, %v437_v19 }
  0xea   : > { %405 = vrot.lane.b32.xlu1 %v2869_v54, %s2642_s30  ;;  %409 = vrot.lane.b32.xlu0 %v2839_v40, %s2642_s30  ;;  %v440_v40 = vrot.slane %v2846_v44, 2  ;;  %v3070_v44 = vsel %vm423_vm5, %v424_v29, %v425_v61  ;;  %v429_v54 = vrot.slane %v2860_v49, 2  ;;  %v2643_v49 = vmov 1934713408  }
  0xec   : > { %v3050_v27 = vsel %vm423_vm5, %v440_v40, %v442_v26  ;;  %v3090_v28 = vsel %vm423_vm5, %v439_v35, %v440_v40 }
  0xee   : > { %413 = vrot.lane.b32.xlu1 %v2872_v55, %s2642_s30  ;;  %454 = vrot.lane.b32.xlu0 %v3028_v3, %s2640_s24  ;;  %v3079_v55 = vsel %vm423_vm5, %v429_v54, %v430_v63 }
  0xf2   : > { %458 = vrot.lane.b32.xlu1 %v3038_v20, %s2640_s24  ;;  %462 = vrot.lane.b32.xlu0 %v3041_v18, %s2640_s24 }
  0xf6   : > { %466 = vrot.lane.b32.xlu1 %v3050_v27, %s2640_s24  ;;  %375 = vrot.lane.b32.xlu0 %v2883_v60, %s2640_s24 }
  0xfa   : > { %379 = vrot.lane.b32.xlu1 %v2898_v1, %s2640_s24  ;;  %383 = vrot.lane.b32.xlu0 %v2875_v56, %s2640_s24 }
  0xfe   : > { %387 = vrot.lane.b32.xlu1 %v2895_v0, %s2640_s24  ;;  %399 = vrot.lane.b32.xlu0 %v2883_v60, %s2642_s30  ;;  %v567_v60 = vunpack.c.l.s4 %v2643_v49 }
 0x100   : > { %v568_v22 = vunpack.c.0.s8 %v567_v60 }
 0x102   : > { %403 = vrot.lane.b32.xlu1 %v2898_v1, %s2642_s30  ;;  %407 = vrot.lane.b32.xlu0 %v2875_v56, %s2642_s30  ;;  %v3082_v56 = vsel %vm423_vm5, %v434_v48, %v435_v36  ;;  %v3112_v36 = vsub.s32 %v568_v22, %v2821_v30 }
 0x104   : > { %v3124_v30 = vrot.slane %v1176_v15, %v3112_v36  ;;  %v1200_v2 = vrot.slane %v1192_v46, %v3112_v36  ;;  %v1368_v7 = vrot.slane %v1360_v23, %v3112_v36  ;;  %v1207_v23 = vrot.slane %v1193_v51, %v3112_v36 }
 0x106   : > { %411 = vrot.lane.b32.xlu1 %v2895_v0, %s2642_s30  ;;  %452 = vrot.lane.b32.xlu0 %v3070_v44, %s2640_s24  ;;  %3806 = vst [vmem:[#allocation12_spill] sm:$0xff] %v3124_v30 }
 0x10a   : > { %456 = vrot.lane.b32.xlu1 %v3079_v55, %s2640_s24  ;;  %460 = vrot.lane.b32.xlu0 %v3082_v56, %s2640_s24 }
 0x10e   : > { %464 = vrot.lane.b32.xlu1 %v3090_v28, %s2640_s24  ;;  %478 = vrot.lane.b32.xlu0 %v3028_v3, %s2642_s30 }
 0x112   : > { %482 = vrot.lane.b32.xlu1 %v3038_v20, %s2642_s30  ;;  %486 = vrot.lane.b32.xlu0 %v3041_v18, %s2642_s30 }
 0x116   : > { %490 = vrot.lane.b32.xlu1 %v3050_v27, %s2642_s30  ;;  %476 = vrot.lane.b32.xlu0 %v3070_v44, %s2642_s30 }
 0x11a   : > { %480 = vrot.lane.b32.xlu1 %v3079_v55, %s2642_s30  ;;  %484 = vrot.lane.b32.xlu0 %v3082_v56, %s2642_s30 }
 0x11e   : > { %488 = vrot.lane.b32.xlu1 %v3090_v28, %s2642_s30 }
 0x130   : > { %v297_v45 = vpop.permute.xlu0 %296  ;;  %v301_v0 = vpop.permute.xlu1 %300 }
 0x134   : > { %v305_v1 = vpop.permute.xlu0 %304 }
 0x135   : > { %v1144_v6 = vcombine.low %v297_v45, %v305_v1  ;;  %v1145_v24 = vcombine.high %v297_v45, %v305_v1 }
 0x137   : > { %v1152_v4 = vrot.slane %v1144_v6, %v2865_v52  ;;  %v1159_v26 = vrot.slane %v1145_v24, %v2865_v52  ;;  %v3130_v24 = vrot.slane %v1344_v12, %v3112_v36 }
 0x138   : > { %v309_v37 = vpop.permute.xlu1 %308  ;;  %v321_v61 = vpop.permute.xlu0 %320 }
 0x139   : > { %v1160_v62 = vcombine.low %v301_v0, %v309_v37  ;;  %v1161_v63 = vcombine.high %v301_v0, %v309_v37  ;;  %v1359_v37 = vrot.slane %v1345_v13, %v3112_v36 }
 0x13b   : > { %v1168_v19 = vrot.slane %v1160_v62, %v2865_v52  ;;  %v1175_v40 = vrot.slane %v1161_v63, %v2865_v52  ;;  %v1191_v63 = vrot.slane %v1177_v17, %v3112_v36 }
 0x13c   : > { %v325_v29 = vpop.permute.xlu1 %324  ;;  %v329_v48 = vpop.permute.xlu0 %328 }
 0x13d   : > { %v1208_v54 = vcombine.low %v1152_v4, %v1168_v19  ;;  %v1209_v35 = vcombine.high %v1152_v4, %v1168_v19  ;;  %v1224_v45 = vcombine.low %v1159_v26, %v1175_v40  ;;  %v1248_v60 = vcombine.low %v321_v61, %v329_v48 }
 0x13e   : > { %v1249_v0 = vcombine.high %v321_v61, %v329_v48  ;;  %v1225_v1 = vcombine.high %v1159_v26, %v1175_v40 }
 0x13f   : > { %v3118_v49 = vrot.slane %v1208_v54, %v3112_v36  ;;  %v1223_v4 = vrot.slane %v1209_v35, %v3112_v36  ;;  %v1232_v12 = vrot.slane %v1224_v45, %v3112_v36  ;;  %v1256_v13 = vrot.slane %v1248_v60, %v2865_v52 }
 0x140   : > { %v333_v6 = vpop.permute.xlu1 %332  ;;  %v295_v22 = vpop.permute.xlu0 %294  ;;  %v1263_v19 = vrot.slane %v1249_v0, %v2865_v52  ;;  %v1239_v17 = vrot.slane %v1225_v1, %v3112_v36 }
 0x141   : > { %3805 = vst [vmem:[#allocation11_spill] sm:$0xff] %v3118_v49  ;;  %v1264_v61 = vcombine.low %v325_v29, %v333_v6  ;;  %v1265_v62 = vcombine.high %v325_v29, %v333_v6  ;;  %v1241_v46 = vcombine.high %v3124_v30, %v3118_v49  ;;  %v1375_v29 = vrot.slane %v1361_v43, %v3112_v36 }
 0x142   : > { %v1242_v0 = vcombine.low %v1191_v63, %v1223_v4  ;;  %v1243_v1 = vcombine.high %v1191_v63, %v1223_v4  ;;  %v1244_v6 = vcombine.low %v1200_v2, %v1232_v12  ;;  %v925_v49 = vcombine.high %v3079_v55, %v3090_v28 }
 0x143   : > { %v1272_v9 = vrot.slane %v1264_v61, %v2865_v52  ;;  %v1279_v10 = vrot.slane %v1265_v62, %v2865_v52 }
 0x144   : > { %v299_v40 = vpop.permute.xlu1 %298  ;;  %v303_v26 = vpop.permute.xlu0 %302 }
 0x145   : > { %v1312_v48 = vcombine.low %v1256_v13, %v1272_v9  ;;  %v1313_v54 = vcombine.high %v1256_v13, %v1272_v9  ;;  %v1328_v35 = vcombine.low %v1263_v19, %v1279_v10  ;;  %v1329_v45 = vcombine.high %v1263_v19, %v1279_v10 }
 0x146   : > { %v532_v60 = vcombine.low %v295_v22, %v303_v26  ;;  %v533_v51 = vcombine.high %v295_v22, %v303_v26  ;;  %v1245_v13 = vcombine.high %v1200_v2, %v1232_v12  ;;  %v1246_v19 = vcombine.low %v1207_v23, %v1239_v17 }
 0x147   : > { %v3168_v61 = vrot.slane %v1312_v48, %v3112_v36  ;;  %v1327_v62 = vrot.slane %v1313_v54, %v3112_v36  ;;  %v1336_v33 = vrot.slane %v1328_v35, %v3112_v36  ;;  %v1343_v34 = vrot.slane %v1329_v45, %v3112_v36 }
 0x148   : > { %v540_v8 = vrot.slane %v532_v60, %v2865_v52  ;;  %v307_v14 = vpop.permute.xlu1 %306  ;;  %v319_v43 = vpop.permute.xlu0 %318 }
 0x149   : > { %v548_v9 = vcombine.low %v299_v40, %v307_v14  ;;  %v549_v10 = vcombine.high %v299_v40, %v307_v14  ;;  %v1377_v63 = vcombine.high %v3168_v61, %v3130_v24  ;;  %v1378_v48 = vcombine.low %v1327_v62, %v1359_v37 }
 0x14a   : > { %v1379_v54 = vcombine.high %v1327_v62, %v1359_v37  ;;  %v1380_v35 = vcombine.low %v1336_v33, %v1368_v7  ;;  %v1381_v15 = vcombine.high %v1336_v33, %v1368_v7  ;;  %v1382_v60 = vcombine.low %v1343_v34, %v1375_v29 }
 0x14b   : > { %v556_v22 = vrot.slane %v548_v9, %v2865_v52  ;;  %v563_v26 = vrot.slane %v549_v10, %v2865_v52  ;;  %v2387_v45 = vpack.i.bf16 %v1377_v63, %v1241_v46  ;;  %v2397_v5 = vpack.i.bf16 %v1378_v48, %v1242_v0 }
 0x14c   : > { %v323_v12 = vpop.permute.xlu1 %322  ;;  %v327_v2 = vpop.permute.xlu0 %326  ;;  %v2407_v40 = vpack.i.bf16 %v1379_v54, %v1243_v1  ;;  %v2417_v14 = vpack.i.bf16 %v1380_v35, %v1244_v6  ;;  %v3180_v57 = vpack.i.bf16 %v1381_v15, %v1245_v13  ;;  %v1247_v37 = vcombine.high %v1207_v23, %v1239_v17 }
 0x14d   : > { %v596_v59 = vcombine.low %v540_v8, %v556_v22  ;;  %2388 = vrot.lane.b32.xlu0 %v2387_v45, %s2644_s6  ;;  %v547_v7 = vrot.slane %v533_v51, %v2865_v52  ;;  %v597_v62 = vcombine.high %v540_v8, %v556_v22  ;;  %v3184_v33 = vpack.i.bf16 %v1382_v60, %v1246_v19 }
 0x14e   : > { %v1383_v9 = vcombine.high %v1343_v34, %v1375_v29  ;;  %v636_v10 = vcombine.low %v319_v43, %v327_v2  ;;  %v637_v0 = vcombine.high %v319_v43, %v327_v2  ;;  %v3193_v15 = vrot.slane %v564_v42, %v3112_v36 }
 0x14f   : > { %v3187_v46 = vrot.slane %v596_v59, %v3112_v36  ;;  %v612_v1 = vcombine.low %v547_v7, %v563_v26  ;;  %v613_v6 = vcombine.high %v547_v7, %v563_v26  ;;  %v3201_v29 = vrot.slane %v732_v25, %v3112_v36 }
 0x150   : > { %3808 = vst [vmem:[#allocation14_spill] sm:$0xff] %v3193_v15  ;;  %v331_v17 = vpop.permute.xlu1 %330  ;;  %v3195_v23 = vpop.permute.xlu0 %377  ;;  %v3203_v59 = vpack.i.bf16 %v1383_v9, %v1247_v37  ;;  %v747_v8 = vrot.slane %v733_v31, %v3112_v36  ;;  %v611_v43 = vrot.slane %v597_v62, %v3112_v36  ;;  %v579_v25 = vrot.slane %v565_v53, %v3112_v36 }
 0x151   : > { %3807 = vst [vmem:[#allocation13_spill] sm:$0xff] %v3187_v46  ;;  %3809 = vst [vmem:[#allocation15_spill] sm:$0xff] %v3201_v29  ;;  %v652_v34 = vcombine.low %v323_v12, %v331_v17  ;;  %v653_v51 = vcombine.high %v323_v12, %v331_v17  ;;  %2398 = vrot.lane.b32.xlu0 %v2397_v5, %s2645_s7  ;;  %v588_v5 = vrot.slane %v580_v58, %v3112_v36 }
 0x152   : > { %v756_v13 = vrot.slane %v748_v50, %v3112_v36  ;;  %v644_v11 = vrot.slane %v636_v10, %v2865_v52  ;;  %v651_v16 = vrot.slane %v637_v0, %v2865_v52  ;;  %v620_v38 = vrot.slane %v612_v1, %v3112_v36 }
 0x153   : > { %v660_v31 = vrot.slane %v652_v34, %v2865_v52  ;;  %v667_v19 = vrot.slane %v653_v51, %v2865_v52  ;;  %v627_v41 = vrot.slane %v613_v6, %v3112_v36  ;;  %v3810_v58 = vcombine.high %v2981_v39, %v2986_v47 }
 0x154   : > { %v382_v53 = vpop.permute.xlu1 %381  ;;  %v386_v63 = vpop.permute.xlu0 %385  ;;  %v3811_v50 = vcombine.high %v2960_v32, %v2947_v21  ;;  %v629_v12 = vcombine.high %v3193_v15, %v3187_v46  ;;  %v630_v2 = vcombine.low %v579_v25, %v611_v43  ;;  %v631_v39 = vcombine.high %v579_v25, %v611_v43 }
 0x155   : > { %v595_v48 = vrot.slane %v3810_v58, %v3112_v36  ;;  %v700_v35 = vcombine.low %v644_v11, %v660_v31  ;;  %v701_v22 = vcombine.high %v644_v11, %v660_v31  ;;  %v716_v26 = vcombine.low %v651_v16, %v667_v19  ;;  %2408 = vrot.lane.b32.xlu0 %v2407_v40, %s2646_s8 }
 0x156   : > { %v763_v54 = vrot.slane %v3811_v50, %v3112_v36  ;;  %v717_v45 = vcombine.high %v651_v16, %v667_v19  ;;  %v1385_v60 = vcombine.high %v3195_v23, %v386_v63  ;;  %v1384_v7 = vcombine.low %v3195_v23, %v386_v63 }
 0x157   : > { %v3244_v47 = vrot.slane %v700_v35, %v3112_v36  ;;  %v715_v21 = vrot.slane %v701_v22, %v3112_v36  ;;  %v724_v32 = vrot.slane %v716_v26, %v3112_v36  ;;  %v632_v9 = vcombine.low %v588_v5, %v620_v38 }
 0x158   : > { %v731_v37 = vrot.slane %v717_v45, %v3112_v36  ;;  %v390_v62 = vpop.permute.xlu1 %389  ;;  %v402_v40 = vpop.permute.xlu0 %401  ;;  %v633_v10 = vcombine.high %v588_v5, %v620_v38  ;;  %v634_v0 = vcombine.low %v595_v48, %v627_v41  ;;  %v1399_v11 = vrot.slane %v1385_v60, %v2865_v52 }
 0x159   : > { %3812 = vst [vmem:[#allocation16_spill] sm:$0xff] %v3244_v47  ;;  %v1400_v1 = vcombine.low %v382_v53, %v390_v62  ;;  %v1401_v6 = vcombine.high %v382_v53, %v390_v62  ;;  %2418 = vrot.lane.b32.xlu0 %v2417_v14, %s2647_s10  ;;  %v765_v17 = vcombine.high %v3244_v47, %v3201_v29 }
 0x15a   : > { %v766_v51 = vcombine.low %v715_v21, %v747_v8  ;;  %v767_v43 = vcombine.high %v715_v21, %v747_v8  ;;  %v768_v25 = vcombine.low %v724_v32, %v756_v13  ;;  %v769_v23 = vcombine.high %v724_v32, %v756_v13 }
 0x15b   : > { %v1415_v5 = vrot.slane %v1401_v6, %v2865_v52  ;;  %v2392_v16 = vpack.i.bf16 %v765_v17, %v629_v12  ;;  %v770_v31 = vcombine.low %v731_v37, %v763_v54  ;;  %v635_v8 = vcombine.high %v595_v48, %v627_v41 }
 0x15c   : > { %v406_v19 = vpop.permute.xlu1 %405  ;;  %v410_v38 = vpop.permute.xlu0 %409  ;;  %v2402_v53 = vpack.i.bf16 %v766_v51, %v630_v2  ;;  %v2412_v14 = vpack.i.bf16 %v767_v43, %v631_v39  ;;  %v2422_v63 = vpack.i.bf16 %v768_v25, %v632_v9  ;;  %v3257_v58 = vpack.i.bf16 %v769_v23, %v633_v10 }
 0x15d   : > { %v1464_v50 = vcombine.low %v1399_v11, %v1415_v5  ;;  %v1465_v35 = vcombine.high %v1399_v11, %v1415_v5  ;;  %2393 = vrot.lane.b32.xlu1 %v2392_v16, %s2644_s6  ;;  %v3261_v13 = vrot.slane %v1400_v1, %v2865_v52  ;;  %v1417_v22 = vcombine.high %v402_v40, %v410_v38 }
 0x15e   : > { %v3263_v26 = vpack.i.bf16 %v770_v31, %v634_v0  ;;  %v771_v45 = vcombine.high %v731_v37, %v763_v54  ;;  %v1416_v60 = vcombine.low %v402_v40, %v410_v38  ;;  %v3266_v12 = vrot.slane %v1384_v7, %v2865_v52 }
 0x15f   : > { %v1536_v32 = vcombine.low %v3038_v20, %v3050_v27  ;;  %v1520_v48 = vcombine.low %v3028_v3, %v3041_v18  ;;  %v1431_v7 = vrot.slane %v1417_v22, %v2865_v52  ;;  %v1521_v10 = vcombine.high %v3028_v3, %v3041_v18 }
 0x160   : > { %v414_v2 = vpop.permute.xlu1 %413  ;;  %v455_v39 = vpop.permute.xlu0 %454  ;;  %v3268_v21 = vpack.i.bf16 %v771_v45, %v635_v8  ;;  %v1448_v54 = vcombine.low %v3266_v12, %v3261_v13  ;;  %v3278_v37 = vrot.slane %v1416_v60, %v2865_v52  ;;  %v1537_v0 = vcombine.high %v3038_v20, %v3050_v27 }
 0x161   : > { %v1432_v62 = vcombine.low %v406_v19, %v414_v2  ;;  %v1433_v41 = vcombine.high %v406_v19, %v414_v2  ;;  %2403 = vrot.lane.b32.xlu1 %v2402_v53, %s2645_s7  ;;  %v3290_v17 = vrot.slane %v1536_v32, %v2865_v52  ;;  %v3296_v23 = vrot.slane %v1520_v48, %v2865_v52 }
 0x162   : > { %v3299_v18 = vrot.slane %v1448_v54, %v3112_v36  ;;  %v1535_v16 = vrot.slane %v1521_v10, %v2865_v52  ;;  %v1551_v31 = vrot.slane %v1537_v0, %v2865_v52  ;;  %v1472_v19 = vrot.slane %v1464_v50, %v3112_v36 }
 0x163   : > { %v3282_v40 = vrot.slane %v1432_v62, %v2865_v52  ;;  %v1447_v9 = vrot.slane %v1433_v41, %v2865_v52  ;;  %v1479_v38 = vrot.slane %v1465_v35, %v3112_v36  ;;  %v1584_v60 = vcombine.low %v3296_v23, %v3290_v17 }
 0x164   : > { %v459_v1 = vpop.permute.xlu1 %458  ;;  %v463_v6 = vpop.permute.xlu0 %462 }
 0x165   : > { %v1480_v51 = vcombine.low %v3278_v37, %v3282_v40  ;;  %v1496_v43 = vcombine.low %v1431_v7, %v1447_v9  ;;  %v1497_v25 = vcombine.high %v1431_v7, %v1447_v9  ;;  %2413 = vrot.lane.b32.xlu1 %v2412_v14, %s2646_s8  ;;  %v1552_v11 = vcombine.low %v455_v39, %v463_v6 }
 0x166   : > { %v1553_v3 = vcombine.high %v455_v39, %v463_v6  ;;  %v1601_v7 = vcombine.high %v1535_v16, %v1551_v31  ;;  %v1600_v9 = vcombine.low %v1535_v16, %v1551_v31 }
 0x167   : > { %v3302_v20 = vrot.slane %v1480_v51, %v3112_v36  ;;  %v1504_v27 = vrot.slane %v1496_v43, %v3112_v36  ;;  %v1511_v5 = vrot.slane %v1497_v25, %v3112_v36  ;;  %v3318_v2 = vrot.slane %v1552_v11, %v2865_v52 }
 0x168   : > { %v467_v53 = vpop.permute.xlu1 %466  ;;  %v3310_v14 = vpop.permute.xlu0 %375  ;;  %v1567_v50 = vrot.slane %v1553_v3, %v2865_v52  ;;  %v3339_v25 = vrot.slane %v1584_v60, %v3112_v36 }
 0x169   : > { %v1568_v22 = vcombine.low %v459_v1, %v467_v53  ;;  %v1569_v45 = vcombine.high %v459_v1, %v467_v53  ;;  %2423 = vrot.lane.b32.xlu1 %v2422_v63, %s2647_s10  ;;  %v1519_v39 = vcombine.high %v1479_v38, %v1511_v5  ;;  %v1516_v35 = vcombine.low %v1472_v19, %v1504_v27 }
 0x16a   : > { %v1517_v41 = vcombine.high %v1472_v19, %v1504_v27  ;;  %v1518_v48 = vcombine.low %v1479_v38, %v1511_v5  ;;  %v1615_v27 = vrot.slane %v1601_v7, %v3112_v36  ;;  %v1608_v5 = vrot.slane %v1600_v9, %v3112_v36 }
 0x16b   : > { %v3322_v32 = vrot.slane %v1568_v22, %v2865_v52  ;;  %v1583_v62 = vrot.slane %v1569_v45, %v2865_v52 }
 0x16c   : > { %v3325_v54 = vpop.permute.xlu1 %379  ;;  %v3327_v63 = vpop.permute.xlu0 %383 }
 0x16d   : > { %v1616_v10 = vcombine.low %v3318_v2, %v3322_v32  ;;  %v1632_v0 = vcombine.low %v1567_v50, %v1583_v62  ;;  %v1633_v1 = vcombine.high %v1567_v50, %v1583_v62  ;;  %2428 = vrot.lane.b32.xlu1 %v3180_v57, %s2648_s11 }
 0x16f   : > { %v3334_v6 = vrot.slane %v1616_v10, %v3112_v36  ;;  %v1640_v51 = vrot.slane %v1632_v0, %v3112_v36  ;;  %v1647_v43 = vrot.slane %v1633_v1, %v3112_v36 }
 0x170   : > { %v3341_v11 = vpop.permute.xlu1 %387  ;;  %v3343_v3 = vpop.permute.xlu0 %399 }
 0x171   : > { %2433 = vrot.lane.b32.xlu1 %v3257_v58, %s2648_s11  ;;  %v1655_v16 = vcombine.high %v1615_v27, %v1647_v43  ;;  %v1652_v31 = vcombine.low %v1608_v5, %v1640_v51  ;;  %v788_v19 = vcombine.low %v3325_v54, %v3341_v11  ;;  %v1653_v38 = vcombine.high %v1608_v5, %v1640_v51 }
 0x172   : > { %v772_v58 = vcombine.low %v3310_v14, %v3327_v63  ;;  %v1654_v62 = vcombine.low %v1615_v27, %v1647_v43  ;;  %v908_v5 = vcombine.low %v3070_v44, %v3082_v56 }
 0x173   : > { %v3357_v45 = vpack.i.bf16 %v1655_v16, %v1519_v39  ;;  %v3359_v60 = vpack.i.bf16 %v1652_v31, %v1516_v35  ;;  %v3365_v50 = vpack.i.bf16 %v1653_v38, %v1517_v41  ;;  %v3368_v7 = vrot.slane %v788_v19, %v2865_v52 }
 0x174   : > { %v3353_v53 = vpop.permute.xlu1 %403  ;;  %v3355_v22 = vpop.permute.xlu0 %407  ;;  %v3376_v10 = vpack.i.bf16 %v1654_v62, %v1518_v48  ;;  %v3379_v0 = vrot.slane %v772_v58, %v2865_v52  ;;  %v924_v41 = vcombine.low %v3079_v55, %v3090_v28 }
 0x175   : > { %2438 = vrot.lane.b32.xlu1 %v3184_v33, %s2649_s12  ;;  %v804_v9 = vcombine.low %v3343_v3, %v3355_v22 }
 0x176   : > { %v836_v1 = vcombine.low %v3379_v0, %v3368_v7  ;;  %v3404_v16 = vrot.slane %v924_v41, %v2865_v52 }
 0x177   : > { %v3390_v51 = vrot.slane %v804_v9, %v2865_v52  ;;  %v3415_v9 = vrot.slane %v908_v5, %v2865_v52 }
 0x178   : > { %v3372_v39 = vpop.permute.xlu1 %411  ;;  %v3374_v35 = vpop.permute.xlu0 %452  ;;  %v3407_v31 = vrot.slane %v836_v1, %v3112_v36 }
 0x179   : > { %v820_v33 = vcombine.low %v3353_v53, %v3372_v39  ;;  %2443 = vrot.lane.b32.xlu1 %v3263_v26, %s2649_s12  ;;  %v821_v55 = vcombine.high %v3353_v53, %v3372_v39 }
 0x17b   : > { %v3393_v48 = vrot.slane %v820_v33, %v2865_v52 }
 0x17c   : > { %v457_v43 = vpop.permute.xlu1 %456  ;;  %v3395_v27 = vpop.permute.xlu0 %460 }
 0x17d   : > { %v868_v26 = vcombine.low %v3390_v51, %v3393_v48  ;;  %2448 = vrot.lane.b32.xlu1 %v3203_v59, %s2650_s13  ;;  %v940_v38 = vcombine.low %v3374_v35, %v3395_v27  ;;  %v941_v28 = vcombine.high %v3374_v35, %v3395_v27 }
 0x17f   : > { %v3410_v19 = vrot.slane %v868_v26, %v3112_v36  ;;  %v3422_v41 = vrot.slane %v940_v38, %v2865_v52  ;;  %v972_v26 = vcombine.low %v3415_v9, %v3404_v16 }
 0x180   : > { %v465_v58 = vpop.permute.xlu1 %464  ;;  %v479_v62 = vpop.permute.xlu0 %478 }
 0x181   : > { %v956_v33 = vcombine.low %v457_v43, %v465_v58  ;;  %2453 = vrot.lane.b32.xlu1 %v3268_v21, %s2650_s13  ;;  %v3435_v21 = vrot.slane %v972_v26, %v3112_v36  ;;  %v909_v26 = vcombine.high %v3070_v44, %v3082_v56  ;;  %v3460_v44 = vrot.slane %v925_v49, %v2865_v52 }
 0x182   : > { %v805_v49 = vcombine.high %v3343_v3, %v3355_v22  ;;  %v955_v22 = vrot.slane %v941_v28, %v2865_v52 }
 0x183   : > { %v3425_v1 = vrot.slane %v956_v33, %v2865_v52 }
 0x184   : > { %v483_v8 = vpop.permute.xlu1 %482  ;;  %v487_v57 = vpop.permute.xlu0 %486 }
 0x185   : > { %v1004_v5 = vcombine.low %v3422_v41, %v3425_v1  ;;  %v1656_v34 = vcombine.low %v479_v62, %v487_v57  ;;  %v1657_v4 = vcombine.high %v479_v62, %v487_v57 }
 0x187   : > { %v3432_v59 = vrot.slane %v1004_v5, %v3112_v36  ;;  %v3440_v46 = vrot.slane %v1656_v34, %v2865_v52  ;;  %v957_v34 = vcombine.high %v457_v43, %v465_v58 }
 0x188   : > { %v491_v38 = vpop.permute.xlu1 %490  ;;  %v477_v42 = vpop.permute.xlu0 %476 }
 0x189   : > { %v1672_v33 = vcombine.low %v483_v8, %v491_v38  ;;  %v1673_v29 = vcombine.high %v483_v8, %v491_v38  ;;  %v1671_v8 = vrot.slane %v1657_v4, %v2865_v52 }
 0x18b   : > { %v3443_v15 = vrot.slane %v1672_v33, %v2865_v52  ;;  %v1687_v5 = vrot.slane %v1673_v29, %v2865_v52  ;;  %v3457_v29 = vrot.slane %v909_v26, %v2865_v52  ;;  %v789_v26 = vcombine.high %v3325_v54, %v3341_v11 }
 0x18c   : > { %v481_v57 = vpop.permute.xlu1 %480  ;;  %v485_v62 = vpop.permute.xlu0 %484  ;;  %v773_v54 = vcombine.high %v3310_v14, %v3327_v63  ;;  %v1585_v11 = vcombine.high %v3296_v23, %v3290_v17  ;;  %v1617_v14 = vcombine.high %v3318_v2, %v3322_v32  ;;  %v819_v23 = vrot.slane %v805_v49, %v2865_v52 }
 0x18d   : > { %v1689_v38 = vcombine.high %v3440_v46, %v3443_v15  ;;  %v1704_v47 = vcombine.low %v1671_v8, %v1687_v5  ;;  %v1044_v30 = vcombine.low %v477_v42, %v485_v62  ;;  %v1045_v4 = vcombine.high %v477_v42, %v485_v62 }
 0x18e   : > { %v1705_v53 = vcombine.high %v1671_v8, %v1687_v5  ;;  %v988_v3 = vcombine.low %v3457_v29, %v3460_v44  ;;  %v3503_v17 = vrot.slane %v789_v26, %v2865_v52  ;;  %v1649_v63 = vcombine.high %v3339_v25, %v3334_v6 }
 0x18f   : > { %v3454_v33 = vrot.slane %v1689_v38, %v3112_v36  ;;  %v3473_v38 = vrot.slane %v957_v34, %v2865_v52  ;;  %v3476_v39 = vrot.slane %v1044_v30, %v2865_v52  ;;  %v3483_v27 = vrot.slane %v1704_v47, %v3112_v36 }
 0x190   : > { %v489_v56 = vpop.permute.xlu1 %488  ;;  %v3492_v30 = vrot.slane %v821_v55, %v2865_v52  ;;  %v1059_v5 = vrot.slane %v1045_v4, %v2865_v52  ;;  %v3510_v8 = vrot.slane %v1705_v53, %v3112_v36  ;;  %v1449_v2 = vcombine.high %v3266_v12, %v3261_v13 }
 0x191   : > { %v1060_v43 = vcombine.low %v481_v57, %v489_v56  ;;  %v1061_v58 = vcombine.high %v481_v57, %v489_v56  ;;  %1897 = vrot.lane.b32.xlu0 %v3454_v33, %s2645_s7  ;;  %v1020_v57 = vcombine.low %v955_v22, %v3473_v38  ;;  %v1481_v32 = vcombine.high %v3278_v37, %v3282_v40 }
 0x192   : > { %v787_v55 = vrot.slane %v773_v54, %v2865_v52  ;;  %v1513_v56 = vcombine.high %v3299_v18, %v3302_v20  ;;  %v884_v28 = vcombine.low %v819_v23, %v3492_v30  ;;  %v973_v4 = vcombine.high %v3415_v9, %v3404_v16 }
 0x193   : > { %v3479_v42 = vrot.slane %v1060_v43, %v2865_v52  ;;  %v1075_v35 = vrot.slane %v1061_v58, %v2865_v52  ;;  %v1631_v13 = vrot.slane %v1617_v14, %v3112_v36  ;;  %v1005_v52 = vcombine.high %v3422_v41, %v3425_v1 }
 0x194   : > { %v852_v12 = vcombine.low %v787_v55, %v3503_v17  ;;  %v2457_v37 = vpack.i.bf16 %v1649_v63, %v1513_v56  ;;  %v1028_v40 = vrot.slane %v1020_v57, %v3112_v36  ;;  %v1037_v26 = vcombine.high %v3435_v21, %v3432_v59 }
 0x195   : > { %v1077_v47 = vcombine.high %v3476_v39, %v3479_v42  ;;  %1937 = vrot.lane.b32.xlu0 %v3483_v27, %s2647_s10  ;;  %v1092_v62 = vcombine.low %v1059_v5, %v1075_v35  ;;  %v1093_v43 = vcombine.high %v1059_v5, %v1075_v35  ;;  %v1463_v49 = vrot.slane %v1449_v2, %v3112_v36 }
 0x196   : > { %v1495_v16 = vrot.slane %v1481_v32, %v3112_v36  ;;  %v1599_v9 = vrot.slane %v1585_v11, %v3112_v36  ;;  %v996_v53 = vrot.slane %v988_v3, %v3112_v36  ;;  %v869_v41 = vcombine.high %v3390_v51, %v3393_v48 }
 0x197   : > { %v3513_v34 = vrot.slane %v1077_v47, %v3112_v36  ;;  %v3535_v58 = vrot.slane %v1092_v62, %v3112_v36  ;;  %v892_v1 = vrot.slane %v884_v28, %v3112_v36  ;;  %v901_v35 = vcombine.high %v3407_v31, %v3410_v19 }
 0x198   : > { %v837_v54 = vcombine.high %v3379_v0, %v3368_v7  ;;  %v860_v11 = vrot.slane %v852_v12, %v3112_v36  ;;  %v1021_v3 = vcombine.high %v955_v22, %v3473_v38  ;;  %v1650_v5 = vcombine.low %v1599_v9, %v1631_v13 }
 0x199   : > { %1977 = vrot.lane.b32.xlu0 %v3510_v8, %s2649_s12  ;;  %1757 = vrot.lane.b32.xlu1 %v3513_v34, %s2645_s7  ;;  %v1019_v51 = vrot.slane %v1005_v52, %v3112_v36  ;;  %v2462_v48 = vpack.i.bf16 %v1037_v26, %v901_v35  ;;  %v1107_v47 = vrot.slane %v1093_v43, %v3112_v36 }
 0x19a   : > { %v1040_v14 = vcombine.low %v996_v53, %v1028_v40  ;;  %v1514_v63 = vcombine.low %v1463_v49, %v1495_v16  ;;  %v987_v57 = vrot.slane %v973_v4, %v3112_v36  ;;  %v989_v62 = vcombine.high %v3457_v29, %v3460_v44 }
 0x19b   : > { %v883_v2 = vrot.slane %v869_v41, %v3112_v36  ;;  %v885_v7 = vcombine.high %v819_v23, %v3492_v30  ;;  %v904_v0 = vcombine.low %v860_v11, %v892_v1  ;;  %v851_v38 = vrot.slane %v837_v54, %v3112_v36 }
 0x19c   : > { %v853_v22 = vcombine.high %v787_v55, %v3503_v17  ;;  %v2467_v32 = vpack.i.bf16 %v1650_v5, %v1514_v63  ;;  %v1035_v56 = vrot.slane %v1021_v3, %v3112_v36  ;;  %v1038_v4 = vcombine.low %v987_v57, %v1019_v51 }
 0x19d   : > { %2458 = vrot.lane.b32.xlu0 %v2457_v37, %s2644_s6  ;;  %1797 = vrot.lane.b32.xlu1 %v3535_v58, %s2647_s10  ;;  %v2492_v28 = vpack.i.bf16 %v1040_v14, %v904_v0  ;;  %v1041_v12 = vcombine.high %v996_v53, %v1028_v40  ;;  %v1003_v29 = vrot.slane %v989_v62, %v3112_v36 }
 0x19e   : > { %v899_v44 = vrot.slane %v885_v7, %v3112_v36  ;;  %v902_v30 = vcombine.low %v851_v38, %v883_v2  ;;  %v905_v23 = vcombine.high %v860_v11, %v892_v1  ;;  %v1651_v52 = vcombine.high %v1599_v9, %v1631_v13 }
 0x19f   : > { %v867_v37 = vrot.slane %v853_v22, %v3112_v36  ;;  %v1042_v43 = vcombine.low %v1003_v29, %v1035_v56  ;;  %v1515_v40 = vcombine.high %v1463_v49, %v1495_v16  ;;  %v1039_v35 = vcombine.high %v987_v57, %v1019_v51 }
 0x1a0   : > { %v2472_v17 = vpack.i.bf16 %v1038_v4, %v902_v30  ;;  %v2502_v55 = vpack.i.bf16 %v1041_v12, %v905_v23  ;;  %v903_v1 = vcombine.high %v851_v38, %v883_v2  ;;  %v1043_v9 = vcombine.high %v1003_v29, %v1035_v56  ;;  %v3815_v12 = vld [vmem:[#allocation12_spill] sm:$0xff]  ;;  %v3816_v29 = vld [vmem:[#allocation11_spill] sm:$0xff] }
 0x1a1   : > { %2463 = vrot.lane.b32.xlu0 %v2462_v48, %s2644_s6  ;;  %1837 = vrot.lane.b32.xlu1 %v1107_v47, %s2649_s12  ;;  %v906_v26 = vcombine.low %v867_v37, %v899_v44  ;;  %v2477_v53 = vpack.i.bf16 %v1651_v52, %v1515_v40  ;;  %v907_v54 = vcombine.high %v867_v37, %v899_v44  ;;  %v3813_v16 = vmov 0.0  }
 0x1a2   : > { %v2482_v13 = vpack.i.bf16 %v1039_v35, %v903_v1  ;;  %v1688_v49 = vcombine.low %v3440_v46, %v3443_v15  ;;  %v1109_v3 = vcombine.high %v3513_v34, %v3813_v16  ;;  %v1110_v5 = vcombine.high %v3535_v58, %v3813_v16  ;;  %v3818_v1 = vld [vmem:[#allocation14_spill] sm:$0xff] }
 0x1a3   : > { %v2512_v41 = vpack.i.bf16 %v1042_v43, %v906_v26  ;;  %v2522_v11 = vpack.i.bf16 %v1043_v9, %v907_v54  ;;  %v1111_v15 = vcombine.high %v1107_v47, %v3813_v16  ;;  %v1723_v34 = vcombine.high %v3510_v8, %v3813_v16 }
 0x1a4   : > { %v3817_v44 = vcombine.low %v3815_v12, %v3816_v29 }
 0x1a5   : > { %2468 = vrot.lane.b32.xlu0 %v2467_v32, %s2645_s7  ;;  %2493 = vrot.lane.b32.xlu1 %v2492_v28, %s2647_s10  ;;  %v3814_v28 = vcombine.low %v3168_v61, %v3130_v24 }
 0x1a9   : > { %2473 = vrot.lane.b32.xlu0 %v2472_v17, %s2645_s7  ;;  %2503 = vrot.lane.b32.xlu1 %v2502_v55, %s2648_s11 }
 0x1ad   : > { %2478 = vrot.lane.b32.xlu0 %v2477_v53, %s2646_s8  ;;  %2513 = vrot.lane.b32.xlu1 %v2512_v41, %s2649_s12 }
 0x1b1   : > { %2483 = vrot.lane.b32.xlu0 %v2482_v13, %s2646_s8  ;;  %2518 = vrot.lane.b32.xlu1 %v3357_v45, %s2650_s13  ;;  %v1076_v45 = vcombine.low %v3476_v39, %v3479_v42  ;;  %v1722_v42 = vcombine.high %v3483_v27, %v3813_v16  ;;  %v3819_v13 = vld [vmem:[#allocation13_spill] sm:$0xff] }
 0x1b2   : > { %v3820_v9 = vcombine.low %v3818_v1, %v3819_v13 }
 0x1b5   : > { %2488 = vrot.lane.b32.xlu0 %v3359_v60, %s2647_s10  ;;  %2523 = vrot.lane.b32.xlu1 %v2522_v11, %s2650_s13  ;;  %v3594_v60 = vrot.slane %v1688_v49, %v3112_v36  ;;  %v3821_v11 = vld [vmem:[#allocation16_spill] sm:$0xff]  ;;  %v3822_v49 = vld [vmem:[#allocation15_spill] sm:$0xff] }
 0x1b7   : > { %v1720_v46 = vcombine.high %v3594_v60, %v3813_v16 }
 0x1b9   : > { %2498 = vrot.lane.b32.xlu0 %v3365_v50, %s2648_s11  ;;  %1777 = vrot.lane.b32.xlu1 %v1109_v3, %s2646_s8  ;;  %v3603_v50 = vrot.slane %v1076_v45, %v3112_v36 }
 0x1bb   : > { %v1108_v39 = vcombine.high %v3603_v50, %v3813_v16 }
 0x1bd   : > { %2508 = vrot.lane.b32.xlu0 %v3376_v10, %s2649_s12  ;;  %1817 = vrot.lane.b32.xlu1 %v1110_v5, %s2648_s11  ;;  %v1721_v10 = vcombine.high %v3454_v33, %v3813_v16  ;;  %v3823_v16 = vcombine.low %v3821_v11, %v3822_v49 }
 0x1bf   : > { %v2389_v58 = vpop.permute.xlu0 %2388 }
 0x1c0   : > { %v2391_v62 = vunpack.i.h.bf16 %v2389_v58  ;;  %v2390_v27 = vunpack.i.l.bf16 %v2389_v58 }
 0x1c1   : > { %1877 = vrot.lane.b32.xlu0 %v1720_v46, %s2644_s6  ;;  %1857 = vrot.lane.b32.xlu1 %v1111_v15, %s2650_s13 }
 0x1c2   : > { %v2047_v4 = vsel %vm2004_vm6, %v3814_v28, %v2391_v62  ;;  %v2046_v30 = vsel %vm2004_vm6, %v3817_v44, %v2390_v27 }
 0x1c3   : > { %v2399_v47 = vpop.permute.xlu0 %2398 }
 0x1c4   : > { %v2401_v7 = vunpack.i.h.bf16 %v2399_v47  ;;  %v2400_v0 = vunpack.i.l.bf16 %v2399_v47 }
 0x1c5   : > { %1737 = vrot.lane.b32.xlu0 %v1108_v39, %s2644_s6 }
 0x1c6   : > { %v2051_v37 = vsel %vm2010_vm7, %v2046_v30, %v2400_v0  ;;  %v2052_v17 = vsel %vm2010_vm7, %v2047_v4, %v2401_v7 }
 0x1c7   : > { %v2409_v33 = vpop.permute.xlu0 %2408 }
 0x1c8   : > { %v2411_v8 = vunpack.i.h.bf16 %v2409_v33  ;;  %v2410_v38 = vunpack.i.l.bf16 %v2409_v33 }
 0x1c9   : > { %1917 = vrot.lane.b32.xlu0 %v1721_v10, %s2646_s8 }
 0x1ca   : > { %v2056_v40 = vsel %vm2016_vm8, %v2051_v37, %v2410_v38  ;;  %v2057_v26 = vsel %vm2016_vm8, %v2052_v17, %v2411_v8 }
 0x1cb   : > { %v2419_v2 = vpop.permute.xlu0 %2418 }
 0x1cc   : > { %v2421_v32 = vunpack.i.h.bf16 %v2419_v2  ;;  %v2420_v56 = vunpack.i.l.bf16 %v2419_v2 }
 0x1cd   : > { %1957 = vrot.lane.b32.xlu0 %v1722_v42, %s2648_s11 }
 0x1ce   : > { %v2061_v41 = vsel %vm2022_vm9, %v2056_v40, %v2420_v56  ;;  %v2062_v35 = vsel %vm2022_vm9, %v2057_v26, %v2421_v32 }
 0x1cf   : > { %v2394_v36 = vpop.permute.xlu1 %2393 }
 0x1d0   : > { %v2396_v23 = vunpack.i.h.bf16 %v2394_v36  ;;  %v2395_v52 = vunpack.i.l.bf16 %v2394_v36 }
 0x1d1   : > { %1997 = vrot.lane.b32.xlu0 %v1723_v34, %s2650_s13 }
 0x1d2   : > { %v2005_v54 = vsel %vm2004_vm6, %v3820_v9, %v2395_v52  ;;  %v2006_v3 = vsel %vm2004_vm6, %v3823_v16, %v2396_v23 }
 0x1d3   : > { %v2404_v51 = vpop.permute.xlu1 %2403 }
 0x1d4   : > { %v2406_v55 = vunpack.i.h.bf16 %v2404_v51  ;;  %v2405_v43 = vunpack.i.l.bf16 %v2404_v51 }
 0x1d6   : > { %v2011_v46 = vsel %vm2010_vm7, %v2005_v54, %v2405_v43  ;;  %v2012_v15 = vsel %vm2010_vm7, %v2006_v3, %v2406_v55 }
 0x1d7   : > { %v2414_v48 = vpop.permute.xlu1 %2413 }
 0x1d8   : > { %v2416_v39 = vunpack.i.h.bf16 %v2414_v48  ;;  %v2415_v10 = vunpack.i.l.bf16 %v2414_v48 }
 0x1da   : > { %v2017_v0 = vsel %vm2016_vm8, %v2011_v46, %v2415_v10  ;;  %v3824_v46 = vcombine.low %v3435_v21, %v3432_v59 }
 0x1db   : > { %v3619_v14 = vpop.permute.xlu1 %2423 }
 0x1dc   : > { %v2426_v42 = vunpack.i.h.bf16 %v3619_v14  ;;  %v2425_v36 = vunpack.i.l.bf16 %v3619_v14  ;;  %v2018_v14 = vsel %vm2016_vm8, %v2012_v15, %v2416_v39  ;;  %v3825_v39 = vcombine.low %v3407_v31, %v3410_v19 }
 0x1df   : > { %v2429_v63 = vpop.permute.xlu1 %2428 }
 0x1e0   : > { %v2431_v24 = vunpack.i.h.bf16 %v2429_v63  ;;  %v2430_v61 = vunpack.i.l.bf16 %v2429_v63 }
 0x1e2   : > { %v2066_v58 = vsel %vm2028_vm10, %v2061_v41, %v2430_v61  ;;  %v2067_v51 = vsel %vm2028_vm10, %v2062_v35, %v2431_v24 }
 0x1e3   : > { %v3621_v57 = vpop.permute.xlu1 %2433 }
 0x1e4   : > { %v2436_v47 = vunpack.i.h.bf16 %v3621_v57  ;;  %v2435_v33 = vunpack.i.l.bf16 %v3621_v57  ;;  %v2024_v57 = vsel %vm2022_vm9, %v2018_v14, %v2426_v42 }
 0x1e6   : > { %v2030_v4 = vsel %vm2028_vm10, %v2024_v57, %v2436_v47 }
 0x1e7   : > { %v2439_v22 = vpop.permute.xlu1 %2438 }
 0x1e8   : > { %v2441_v45 = vunpack.i.h.bf16 %v2439_v22  ;;  %v2440_v5 = vunpack.i.l.bf16 %v2439_v22  ;;  %v2023_v22 = vsel %vm2022_vm9, %v2017_v0, %v2425_v36 }
 0x1e9   : > { %v2029_v28 = vsel %vm2028_vm10, %v2023_v22, %v2435_v33 }
 0x1ea   : > { %v2071_v7 = vsel %vm2034_vm11, %v2066_v58, %v2440_v5  ;;  %v2072_v48 = vsel %vm2034_vm11, %v2067_v51, %v2441_v45 }
 0x1eb   : > { %v2444_v53 = vpop.permute.xlu1 %2443 }
 0x1ec   : > { %v2446_v27 = vunpack.i.h.bf16 %v2444_v53  ;;  %v2445_v2 = vunpack.i.l.bf16 %v2444_v53 }
 0x1ee   : > { %v2035_v44 = vsel %vm2034_vm11, %v2029_v28, %v2445_v2  ;;  %v2036_v30 = vsel %vm2034_vm11, %v2030_v4, %v2446_v27 }
 0x1ef   : > { %v2449_v34 = vpop.permute.xlu1 %2448 }
 0x1f0   : > { %v2451_v63 = vunpack.i.h.bf16 %v2449_v34  ;;  %v2450_v62 = vunpack.i.l.bf16 %v2449_v34 }
 0x1f2   : > { %v2076_v8 = vsel %vm2040_vm12, %v2071_v7, %v2450_v62  ;;  %v2077_v38 = vsel %vm2040_vm12, %v2072_v48, %v2451_v63 }
 0x1f3   : > { %v2454_v32 = vpop.permute.xlu1 %2453  ;;  %v2315_v56 = vpack.c.bf16 %v2077_v38, %v2076_v8 }
 0x1f4   : > { %v2456_v12 = vunpack.i.h.bf16 %v2454_v32  ;;  %v2455_v29 = vunpack.i.l.bf16 %v2454_v32 }
 0x1f5   : > { %2316 = vmatprep.subr.bf16.mxu0 %v2315_v56 }
 0x1f6   : > { %v2041_v23 = vsel %vm2040_vm12, %v2035_v44, %v2455_v29  ;;  %v2042_v52 = vsel %vm2040_vm12, %v2036_v30, %v2456_v12 }
 0x1f7   : > { %v2317_v37 = vpack.c.bf16 %v2042_v52, %v2041_v23 }
 0x1f9   : > { %2318 = vmatpush1.bf16.msra.mxu0 %v2317_v37 }
 0x203   : > { %v3667_v17 = vpop.permute.xlu0 %1897 }
 0x207   : > { %v3669_v55 = vpop.permute.xlu0 %1937 }
 0x20b   : > { %v3671_v43 = vpop.permute.xlu0 %1977  ;;  %v3673_v40 = vpop.permute.xlu1 %1757 }
 0x20f   : > { %v2459_v26 = vpop.permute.xlu0 %2458  ;;  %v3675_v24 = vpop.permute.xlu1 %1797 }
 0x210   : > { %v2461_v14 = vunpack.i.h.bf16 %v2459_v26  ;;  %v2460_v8 = vunpack.i.l.bf16 %v2459_v26  ;;  %v3826_v26 = vcombine.low %v3339_v25, %v3334_v6 }
 0x213   : > { %v2464_v61 = vpop.permute.xlu0 %2463  ;;  %v3677_v53 = vpop.permute.xlu1 %1837 }
 0x214   : > { %v2466_v11 = vunpack.i.h.bf16 %v2464_v61  ;;  %v2465_v49 = vunpack.i.l.bf16 %v2464_v61  ;;  %v2049_v61 = vsel %vm2004_vm6, %v3826_v26, %v2461_v14 }
 0x216   : > { %v2008_v15 = vsel %vm2004_vm6, %v3824_v46, %v2466_v11  ;;  %v2007_v10 = vsel %vm2004_vm6, %v3825_v39, %v2465_v49 }
 0x217   : > { %v2469_v41 = vpop.permute.xlu0 %2468  ;;  %v2494_v35 = vpop.permute.xlu1 %2493 }
 0x218   : > { %v2496_v34 = vunpack.i.h.bf16 %v2494_v35  ;;  %v2495_v58 = vunpack.i.l.bf16 %v2494_v35  ;;  %v2471_v57 = vunpack.i.h.bf16 %v2469_v41  ;;  %v2470_v32 = vunpack.i.l.bf16 %v2469_v41 }
 0x219   : > { %v3827_v41 = vcombine.low %v3299_v18, %v3302_v20 }
 0x21b   : > { %v2474_v1 = vpop.permute.xlu0 %2473  ;;  %v2504_v13 = vpop.permute.xlu1 %2503  ;;  %v2048_v35 = vsel %vm2004_vm6, %v3827_v41, %v2460_v8 }
 0x21c   : > { %v2476_v16 = vunpack.i.h.bf16 %v2474_v1  ;;  %v2475_v3 = vunpack.i.l.bf16 %v2474_v1  ;;  %v2506_v59 = vunpack.i.h.bf16 %v2504_v13  ;;  %v2505_v21 = vunpack.i.l.bf16 %v2504_v13 }
 0x21e   : > { %v2013_v51 = vsel %vm2010_vm7, %v2007_v10, %v2475_v3  ;;  %v2014_v47 = vsel %vm2010_vm7, %v2008_v15, %v2476_v16 }
 0x21f   : > { %v2479_v9 = vpop.permute.xlu0 %2478  ;;  %v2514_v54 = vpop.permute.xlu1 %2513 }
 0x220   : > { %v2516_v2 = vunpack.i.h.bf16 %v2514_v54  ;;  %v2515_v7 = vunpack.i.l.bf16 %v2514_v54  ;;  %v2481_v4 = vunpack.i.h.bf16 %v2479_v9  ;;  %v2480_v12 = vunpack.i.l.bf16 %v2479_v9 }
 0x221   : > { %v2053_v9 = vsel %vm2010_vm7, %v2048_v35, %v2470_v32  ;;  %v2054_v54 = vsel %vm2010_vm7, %v2049_v61, %v2471_v57  ;;  %v2169_v32 = vld [vmem:[#allocation3] sm:$0xff] }
 0x222   : > { %v2058_v11 = vsel %vm2016_vm8, %v2053_v9, %v2480_v12  ;;  %v2059_v49 = vsel %vm2016_vm8, %v2054_v54, %v2481_v4  ;;  %v2200_v54 = vld [vmem:[%s3792_s3] sm:$0xff] (!%p2308_p7) }
 0x223   : > { %v2484_v45 = vpop.permute.xlu0 %2483  ;;  %v2519_v5 = vpop.permute.xlu1 %2518 }
 0x224   : > { %v2486_v42 = vunpack.i.h.bf16 %v2484_v45  ;;  %v2485_v36 = vunpack.i.l.bf16 %v2484_v45  ;;  %v2521_v18 = vunpack.i.h.bf16 %v2519_v5  ;;  %v2520_v20 = vunpack.i.l.bf16 %v2519_v5 }
 0x226   : > { %v2019_v33 = vsel %vm2016_vm8, %v2013_v51, %v2485_v36  ;;  %v2020_v63 = vsel %vm2016_vm8, %v2014_v47, %v2486_v42 }
 0x227   : > { %v2025_v62 = vsel %vm2022_vm9, %v2019_v33, %v2495_v58  ;;  %v2026_v31 = vsel %vm2022_vm9, %v2020_v63, %v2496_v34  ;;  %v2489_v19 = vpop.permute.xlu0 %2488  ;;  %v2524_v27 = vpop.permute.xlu1 %2523 }
 0x228   : > { %v2526_v48 = vunpack.i.h.bf16 %v2524_v27  ;;  %v2525_v0 = vunpack.i.l.bf16 %v2524_v27  ;;  %v2031_v38 = vsel %vm2028_vm10, %v2025_v62, %v2505_v21  ;;  %v2032_v22 = vsel %vm2028_vm10, %v2026_v31, %v2506_v59 }
 0x229   : > { %v2037_v56 = vsel %vm2034_vm11, %v2031_v38, %v2515_v7  ;;  %v2038_v28 = vsel %vm2034_vm11, %v2032_v22, %v2516_v2  ;;  %v2491_v23 = vunpack.i.h.bf16 %v2489_v19  ;;  %v2490_v52 = vunpack.i.l.bf16 %v2489_v19 }
 0x22a   : > { %v2043_v44 = vsel %vm2040_vm12, %v2037_v56, %v2525_v0  ;;  %v2044_v30 = vsel %vm2040_vm12, %v2038_v28, %v2526_v48  ;;  %v2176_v28 = vld [vmem:[#allocation4] sm:$0xff] }
 0x22b   : > { %v2499_v29 = vpop.permute.xlu0 %2498  ;;  %v2321_v37 = vpack.c.bf16 %v2044_v30, %v2043_v44  ;;  %v2063_v6 = vsel %vm2022_vm9, %v2058_v11, %v2490_v52  ;;  %v2064_v25 = vsel %vm2022_vm9, %v2059_v49, %v2491_v23  ;;  %v1778_v47 = vpop.permute.xlu1 %1777  ;;  %v2651_v23 = vmov (!%p2308_p7), 0  }
 0x22c   : > { %v2501_v1 = vunpack.i.h.bf16 %v2499_v29  ;;  %v2500_v13 = vunpack.i.l.bf16 %v2499_v29  ;;  %2535 = vset.pattern.permute.xlu0 (!%p2308_p7), %v2651_v23 }
 0x22e   : > { %v2068_v46 = vsel %vm2028_vm10, %v2063_v6, %v2500_v13  ;;  %v2069_v15 = vsel %vm2028_vm10, %v2064_v25, %v2501_v1  ;;  %v2196_v1 = vld [vmem:[%s3791_s2] sm:$0xff] (!%p2308_p7) }
 0x22f   : > { %v2509_v16 = vpop.permute.xlu0 %2508  ;;  %v1818_v27 = vpop.permute.xlu1 %1817 }
 0x230   : > { %v2511_v3 = vunpack.i.h.bf16 %v2509_v16  ;;  %v2510_v45 = vunpack.i.l.bf16 %v2509_v16 }
 0x232   : > { %v2073_v39 = vsel %vm2034_vm11, %v2068_v46, %v2510_v45  ;;  %v2074_v10 = vsel %vm2034_vm11, %v2069_v15, %v2511_v3 }
 0x233   : > { %v1878_v42 = vpop.permute.xlu0 %1877  ;;  %v2078_v36 = vsel %vm2040_vm12, %v2073_v39, %v2520_v20  ;;  %v2079_v34 = vsel %vm2040_vm12, %v2074_v10, %v2521_v18  ;;  %v1858_v48 = vpop.permute.xlu1 %1857 }
 0x234   : > { %v2319_v58 = vpack.c.bf16 %v2079_v34, %v2078_v36  ;;  %v2050_v5 = vsel %vm2004_vm6, %v3594_v60, %v1878_v42 }
 0x235   : > { %v2055_v21 = vsel %vm2010_vm7, %v2050_v5, %v3667_v17 }
 0x236   : > { %2320 = vmatprep.subr.bf16.mxu0 %v2319_v58 }
 0x237   : > { %v1738_v51 = vpop.permute.xlu0 %1737  ;;  %2322 = vmatpush1.bf16.msra.mxu0 %v2321_v37 }
 0x238   : > { %v2009_v33 = vsel %vm2004_vm6, %v3603_v50, %v1738_v51 }
 0x239   : > { %v2015_v63 = vsel %vm2010_vm7, %v2009_v33, %v3673_v40 }
 0x23a   : > { %v2021_v59 = vsel %vm2016_vm8, %v2015_v63, %v1778_v47 }
 0x23b   : > { %v1918_v62 = vpop.permute.xlu0 %1917  ;;  %v2027_v31 = vsel %vm2022_vm9, %v2021_v59, %v3675_v24 }
 0x23c   : > { %v2060_v19 = vsel %vm2016_vm8, %v2055_v21, %v1918_v62  ;;  %v2033_v2 = vsel %vm2028_vm10, %v2027_v31, %v1818_v27 }
 0x23d   : > { %v2065_v60 = vsel %vm2022_vm9, %v2060_v19, %v3669_v55  ;;  %v2039_v17 = vsel %vm2034_vm11, %v2033_v2, %v3677_v53  ;;  %v2081_v55 = vld [vmem:[%s3790_s1] sm:$0xff] }
 0x23e   : > { %v2045_v14 = vsel %vm2040_vm12, %v2039_v17, %v1858_v48 }
 0x23f   : > { %v1958_v50 = vpop.permute.xlu0 %1957 }
 0x240   : > { %v2070_v40 = vsel %vm2028_vm10, %v2065_v60, %v1958_v50 }
 0x241   : > { %v2075_v7 = vsel %vm2034_vm11, %v2070_v40, %v3671_v43 }
 0x243   : > { %v1998_v24 = vpop.permute.xlu0 %1997 }
 0x244   : > { %v2080_v0 = vsel %vm2040_vm12, %v2075_v7, %v1998_v24 }
 0x245   : > { %2303 = vmatprep.subr.msk.mxu0 %vm2086_vm13, %v2080_v0 }
 0x246   : > { %2304 = vmatpush1.msk.msra.mxu0 %vm2086_vm13, %v2045_v14 }
 0x247   : > { %2305 = vmatmul.mubr.msk.f32.vlgmr.msra.gmra.mrb[0].mxu0 %vm2082_vm14, %v2081_v55 }
 0x31a   : > { %v2159_v8 = vpop.f32.mrb[0].mxu0 }
 0x31b   : > { %v2177_v53 = vmul.f32 %v2159_v8, %v2159_v8  ;;  %v2161_v38 = vpop.f32.mrb[1].mxu0  ;;  %2167 = vst [vmem:[%s2166_s22] sm:$0xff] %v2159_v8 }
 0x31c   : > { %2168 = vst [vmem:[%s2166_s22 + $0x8] sm:$0xff] %v2161_v38  ;;  %v2170_v43 = vadd.f32 %v2161_v38, %v2159_v8  ;;  %v2178_v22 = vmul.f32 %v2161_v38, %v2161_v38 }
 0x31e   : > { %v2179_v57 = vadd.f32 %v2178_v22, %v2177_v53  ;;  %2171 = vadd.xlane.f32.xlu0 %v2170_v43 }
 0x320   : > { %2180 = vadd.xlane.f32.xlu1 %v2179_v57 }
 0x323   : > { %v2203_v16 = vld [vmem:[#allocation8] sm:$0xff] (!%p2308_p7)  ;;  %v2204_v25 = vld [vmem:[#allocation8 + $0x8] sm:$0xff] (!%p2308_p7)  ;;  %v2205_v3 = vld [vmem:[#allocation8 + $0x10] sm:$0xff] (!%p2308_p7) }
 0x324   : > { %v2206_v45 = vld [vmem:[#allocation8 + $0x18] sm:$0xff] (!%p2308_p7) }
 0x3aa   : > { %2187 = sbr.rel (%p2308_p7) target bundleno = 1111 (0x457), region = 48 }
 0x3ab   : > { %v2172_v56 = vpop.xlane.xlu0 %2171 }
 0x3ac   : > { %v2173_v4 = vadd.f32 %v2172_v56, %v2169_v32 }
 0x3ad   : > { %v2181_v12 = vpop.xlane.xlu1 %2180 }
 0x3ae   : > { %2175 = vst.msk [vmem:[#allocation3] sm:$0xff] %vm2174_vm15, %v2173_v4  ;;  %v2182_v29 = vadd.f32 %v2181_v12, %v2176_v28 }
 0x3b0   : > { %2183 = vst.msk [vmem:[#allocation4] sm:$0xff] %vm2174_vm15, %v2182_v29 }
 0x3b5   : > { %v2188_v44 = vld [vmem:[#allocation3] sm:$0xff] }
 0x3b6   : > { %v2190_v52 = vmul.f32 0.001953125, %v2188_v44 }
 0x3b7   : > { %v2191_v30 = vld [vmem:[#allocation4] sm:$0xff] }
 0x3b8   : > { %v2192_v37 = vmul.f32 0.001953125, %v2191_v30  ;;  %v2193_v26 = vmul.f32 %v2190_v52, %v2190_v52 }
 0x3ba   : > { %v2194_v61 = vsub.f32 %v2192_v37, %v2193_v26 }
 0x3bc   : > { %v2195_v41 = vmax.f32 %v2194_v61, 0.0 }
 0x3be   : > { %v2197_v35 = vadd.f32 1e-05, %v2195_v41 }
 0x3c0   : > { %2536 = vrsqrt.f32 %v2197_v35 }
 0x3ca   : > { %v2537_v13 = vpop.eup %2536 }
 0x3cb   : > { %v2199_v9 = vmul.f32 %v2537_v13, %v2196_v1 }
 0x3cd   : > { %2209 = vperm.xlu0 %2535, %v2199_v9   ;;  %v2201_v11 = vmul.f32 %v2199_v9, %v2190_v52 }
 0x3cf   : > { %v2202_v49 = vsub.f32 %v2200_v54, %v2201_v11 }
 0x3d1   : > { %2218 = vperm.xlu0 %2535, %v2202_v49  }
 0x44c   : > { %v2210_v6 = vpop.permute.xlu0 %2209 }
 0x44d   : > { %v2212_v18 = vmul.f32 %v2210_v6, %v2203_v16  ;;  %v2213_v20 = vmul.f32 %v2210_v6, %v2204_v25  ;;  %v2214_v46 = vmul.f32 %v2210_v6, %v2205_v3  ;;  %v2215_v15 = vmul.f32 %v2210_v6, %v2206_v45 }
 0x450   : > { %v2219_v39 = vpop.permute.xlu0 %2218 }
 0x451   : > { %v2221_v10 = vadd.f32 %v2219_v39, %v2212_v18  ;;  %v2222_v42 = vadd.f32 %v2219_v39, %v2213_v20  ;;  %v2223_v36 = vadd.f32 %v2219_v39, %v2214_v46  ;;  %v2224_v34 = vadd.f32 %v2219_v39, %v2215_v15 }
 0x453   : > { %v2225_v58 = vmax.f32 %v2221_v10, 0.0  ;;  %v2226_v51 = vmax.f32 %v2222_v42, 0.0  ;;  %v2227_v47 = vmax.f32 %v2223_v36, 0.0  ;;  %v2228_v5 = vmax.f32 %v2224_v34, 0.0 }
 0x455   : > { %2229 = vst [vmem:[#allocation8] sm:$0xff] %v2225_v58  ;;  %2230 = vst [vmem:[#allocation8 + $0x8] sm:$0xff] %v2226_v51 }
 0x456   : > { %2231 = vst [vmem:[#allocation8 + $0x10] sm:$0xff] %v2227_v47  ;;  %2232 = vst [vmem:[#allocation8 + $0x18] sm:$0xff] %v2228_v5 }
 0x457 PF: > { %p2334_p8 = scmp.eq.s32.totalorder %s2698_s19, 1  ;;  %s2652_s29 = smov [#allocation8]  }
 0x458   : > { %s2239_s5 = sshll.u32 %s2652_s29, 4  ;;  %s2240_s5 = int_to_ptr.vmem [resolvable:$true] %s2239_s5 }
 0x459   : > { %s2568_s9 = scalar_lea.vmem %s2240_s5, 512  ;;  %p2575_p10 = scmp.lt.s32.totalorder %s2240_s5, %s2240_s5 }
 0x45a   : > { %p2569_p4 = scmp.ne.s32.totalorder %s2240_s5, %s2568_s9  ;;  %p2576_p12 = scmp.lt.s32.totalorder %s2568_s9, %s2568_s9 }
 0x45c   : > { %p2570_p5 = pnand %p2569_p4, %p2334_p8  ;;  %p2577_p0 = por %p2576_p12, %p2575_p10 }
 0x45e   : > { %p2571_p6 = pneg %p2570_p5 }
 0x460   : > { %p2578_p1 = pnand %p2577_p0, %p2571_p6 }
 0x462   : > { %2581 = shalt.err (!%p2578_p1)
}
 0x463   : > { %s2582_s30 = scalar_lea.hbm %s3793_s4, 512 }
 0x464   : > { %p2583_p2 = scmp.ne.s32.totalorder %s3793_s4, %s2582_s30  ;;  %p2588_p3 = scmp.lt.u32.totalorder %s2582_s30, %s3793_s4 }
 0x466   : > { %p2584_p11 = pnand %p2583_p2, %p2334_p8 }
 0x468   : > { %p2585_p13 = pneg %p2584_p11 }
 0x46a   : > { %p2590_p9 = pnand %p2588_p3, %p2585_p13 }
 0x46c   : > { %2593 = shalt.err (!%p2590_p9)
}
 0x46d   : > { %s2653_s12 = smov 256  }
 0x46e   : > { %2326 = dma.vmem_to_hbm [thread:$0]  (%p2334_p8), %s2240_s5, 512, %s3793_s4, [#allocation7], %s2653_s12, %s2653_s12, %s2644_s6  }
 0x46f   : > { %2615 = dma.done.wait (%p2334_p8), [#allocation7], 512  }
 0x470   : > { %2617 = vsyncadd (%p2334_p8), [#allocation7], 4294966784 }
 0x471 PF: > { %p15_p7 = scmp.ge.s32.totalorder %s2701_s20, 4   ;;  %s3828_s15 = smov %s2624_s16 }
 0x472   : > { %s3829_s16 = smov %s2628_s17  ;;  %s3830_s17 = smov %s2711_s23 }
 0x473   : > { %s3831_s18 = smov %s2701_s20  ;;  %17 = sbr.rel (!%p15_p7) target bundleno = 4 (0x4), region = 82 }
 0x47a   :  { %2255 = vsyncpa [#allocation6], 1 }
 0x47b   :  { %2257 = vsyncpa [#allocation6 + $0x1], 1 }
 0x47c   :  { %2258 = vsyncpa [#allocation7], 1 }
 0x47d   :  { %2260 = vsyncpa [#allocation7 + $0x1], 1 }

</bundles_post_ra>
